<compile_context>
chip_gen: v7x
topology: tpu7x:2x2x1
jax: 0.10.0
libtpu: 0.0.40
codegen_flags: <defaults>
</compile_context>

<pallas_src>
import functools

import jax
import jax.numpy as jnp
from jax import lax
from jax.experimental import pallas as pl
from jax.experimental.pallas import tpu as pltpu

_LANE = 128


def _round_up(x, m):
    return (x + m - 1) // m * m


def _conv_bn_relu_kernel(x_ref, w_ref, scale_ref, bias_ref, o_ref, *,
                         TH, Wo, KH, KW, Cin):
    # x_ref:     (1, 1, TH+KH-1, Wo+KW-1, Cin)  input row-tile incl. halo rows
    # w_ref:     (KH*KW, Cin, TC)               one (Cin, TC) matrix per tap
    # scale_ref: (1, TC)   folded BN scale = gamma / sqrt(var + eps)
    # bias_ref:  (1, TC)   folded BN bias  = beta - mean * scale
    # o_ref:     (1, TH, Wo, TC)                lane-dense output tile
    TC = o_ref.shape[-1]
    x = x_ref[0, 0]                                 # load the tile once (value)
    acc = jnp.zeros((TH * Wo, TC), dtype=jnp.float32)
    for ky in range(KH):
        for kx in range(KW):
            patch = x[ky:ky + TH, kx:kx + Wo, :]    # static value slice
            patch = patch.reshape(TH * Wo, Cin)
            acc = acc + jnp.dot(patch, w_ref[ky * KW + kx],
                                preferred_element_type=jnp.float32)
    y = acc * scale_ref[0] + bias_ref[0]            # fused BatchNorm (eval)
    y = jnp.maximum(y, 0.0)                         # ReLU
    o_ref[0] = y.reshape(TH, Wo, TC).astype(o_ref.dtype)


def conv_bn_relu(x_nchw, weight_oihw, gamma, beta, running_mean, running_var,
                 *, stride=1, pad=1, dilation=1, groups=1, bn_eps=1e-5):
    """ConvBnRelu forward. x_nchw: (N, Cin, H, W). weight_oihw: (Cout, Cin, KH, KW)."""
    assert stride == 1 and dilation == 1 and groups == 1, (
        "only stride=1 / dilation=1 / groups=1 are implemented")
    N, Cin, H, W = x_nchw.shape
    Cout, Cin_w, KH, KW = weight_oihw.shape
    assert Cin == Cin_w

    Ho = H + 2 * pad - KH + 1
    Wo = W + 2 * pad - KW + 1
    Wp = W + 2 * pad

    # ---- tile sizes --------------------------------------------------------
    Cout_pad = _round_up(Cout, _LANE)
    # 256-wide N tile fills the v6e/v7x MXU columns; 128 matches v5e's MXU.
    TC = 256 if Cout_pad % 256 == 0 else 128
    num_c = Cout_pad // TC
    # Bound the f32 accumulator (TH*Wo x TC) to <= ~64K elems (~vreg file).
    max_rows = max(1, 65536 // TC)
    TH = max(1, min(Ho, max_rows // max(1, Wo)))
    num_h = pl.cdiv(Ho, TH)
    Ho_pad = num_h * TH
    THH = TH + KH - 1

    # ---- input: NCHW -> NHWC, zero-pad, split into row tiles with halo -----
    x_nhwc = jnp.transpose(x_nchw, (0, 2, 3, 1))
    x_sp = jnp.pad(x_nhwc,
                   ((0, 0), (pad, pad + (Ho_pad - Ho)), (pad, pad), (0, 0)))
    row_idx = jnp.arange(num_h)[:, None] * TH + jnp.arange(THH)[None, :]
    x_tiles = jnp.take(x_sp, row_idx, axis=1)       # (N, num_h, THH, Wp, Cin)

    # ---- weights: (Cout, Cin, KH, KW) -> (KH*KW, Cin, Cout_pad) ------------
    w_taps = jnp.transpose(weight_oihw, (2, 3, 1, 0)).reshape(KH * KW, Cin, Cout)
    w_taps = jnp.pad(w_taps, ((0, 0), (0, 0), (0, Cout_pad - Cout))).astype(jnp.float32)

    # ---- fold BatchNorm (inference) into per-channel scale & bias ----------
    scale = (gamma / jnp.sqrt(running_var + bn_eps)).astype(jnp.float32)
    bias = (beta - running_mean * scale).astype(jnp.float32)
    scale = jnp.pad(scale, (0, Cout_pad - Cout)).reshape(1, Cout_pad)
    bias = jnp.pad(bias, (0, Cout_pad - Cout)).reshape(1, Cout_pad)

    kernel = functools.partial(_conv_bn_relu_kernel,
                               TH=TH, Wo=Wo, KH=KH, KW=KW, Cin=Cin)

    # ---- explicit VMEM budget (double-buffered blocks + weights) -----------
    bpe = 4
    blk_bytes = 2 * (THH * Wp * Cin + TH * Wo * TC
                     + KH * KW * Cin * TC + 2 * TC) * bpe
    vmem_limit = int(min(max(blk_bytes + (8 << 20), 16 << 20), 64 << 20))

    out_nhwc = pl.pallas_call(
        kernel,
        out_shape=jax.ShapeDtypeStruct((N, Ho_pad, Wo, Cout_pad), x_nchw.dtype),
        grid_spec=pltpu.PrefetchScalarGridSpec(
            num_scalar_prefetch=0,
            grid=(N, num_h, num_c),
            in_specs=[
                pl.BlockSpec((1, 1, THH, Wp, Cin), lambda n, h, c: (n, h, 0, 0, 0)),
                pl.BlockSpec((KH * KW, Cin, TC), lambda n, h, c: (0, 0, c)),
                pl.BlockSpec((1, TC), lambda n, h, c: (0, c)),
                pl.BlockSpec((1, TC), lambda n, h, c: (0, c)),
            ],
            out_specs=pl.BlockSpec((1, TH, Wo, TC), lambda n, h, c: (n, h, 0, c)),
        ),
        compiler_params=pltpu.CompilerParams(
            dimension_semantics=("parallel", "parallel", "parallel"),
            vmem_limit_bytes=vmem_limit),
    )(x_tiles, w_taps, scale, bias)

    # strip padded rows / channels, NHWC -> NCHW to match PyTorch convention.
    out = out_nhwc[:, :Ho, :, :Cout]
    return jnp.transpose(out, (0, 3, 1, 2))


def _reference(x_nchw, weight_oihw, gamma, beta, running_mean, running_var,
               *, pad=1, bn_eps=1e-5):
    y = lax.conv_general_dilated(
        x_nchw, weight_oihw, window_strides=(1, 1),
        padding=((pad, pad), (pad, pad)),
        dimension_numbers=("NCHW", "OIHW", "NCHW"))
    scale = gamma / jnp.sqrt(running_var + bn_eps)
    bias = beta - running_mean * scale
    y = y * scale[None, :, None, None] + bias[None, :, None, None]
    return jnp.maximum(y, 0.0)


if __name__ == "__main__":
    key = jax.random.PRNGKey(0)
    k_x, k_w, k_g, k_b, k_m, k_v = jax.random.split(key, 6)

    N, Cin, H, W = 2, 4, 16, 16
    Cout, KH, KW = 8, 3, 3

    x = jax.random.normal(k_x, (N, Cin, H, W), dtype=jnp.float32)
    weight = jax.random.normal(k_w, (Cout, Cin, KH, KW), dtype=jnp.float32) * 0.1
    gamma = 1.0 + 0.1 * jax.random.normal(k_g, (Cout,), dtype=jnp.float32)
    beta = 0.1 * jax.random.normal(k_b, (Cout,), dtype=jnp.float32)
    running_mean = 0.1 * jax.random.normal(k_m, (Cout,), dtype=jnp.float32)
    running_var = jnp.abs(jax.random.normal(k_v, (Cout,), dtype=jnp.float32)) + 0.5

    out = conv_bn_relu(x, weight, gamma, beta, running_mean, running_var,
                       pad=1, bn_eps=1e-5)
    out = jax.block_until_ready(out)

    ref = _reference(x, weight, gamma, beta, running_mean, running_var,
                     pad=1, bn_eps=1e-5)
    assert out.shape == (N, Cout, H, W)
    assert jnp.allclose(out, ref, atol=1e-4, rtol=1e-4), "mismatch vs reference"

    print("KERNEL_OK")
</pallas_src>

<mosaic_0001>
module attributes {stable_mosaic.version = 11 : i64} {
  func.func @_conv_bn_relu_kernel(%arg0: i32, %arg1: i32, %arg2: i32, %arg3: memref<1x1x18x18x4xf32, #tpu.memory_space<vmem>>, %arg4: memref<9x4x128xf32, #tpu.memory_space<vmem>>, %arg5: memref<1x128xf32, #tpu.memory_space<vmem>>, %arg6: memref<1x128xf32, #tpu.memory_space<vmem>>, %arg7: memref<1x16x16x128xf32, #tpu.memory_space<vmem>>) attributes {dimension_semantics = [#tpu.dimension_semantics<parallel>, #tpu.dimension_semantics<parallel>, #tpu.dimension_semantics<parallel>], iteration_bounds = array<i64: 2, 1, 1>, scalar_prefetch = 0 : i64, scratch_operands = 0 : i64, tpu.core_type = #tpu.core_type<tc>, window_params = [{transform_indices = @transform_0, window_bounds = array<i64: 1, 1, 18, 18, 4>}, {transform_indices = @transform_1, window_bounds = array<i64: 9, 4, 128>}, {transform_indices = @transform_2, window_bounds = array<i64: 1, 128>}, {transform_indices = @transform_3, window_bounds = array<i64: 1, 128>}, {transform_indices = @transform_4, window_bounds = array<i64: 1, 16, 16, 128>}]} {
    %c0 = arith.constant 0 : index
    %c0_0 = arith.constant 0 : index
    %c0_1 = arith.constant 0 : index
    %c0_2 = arith.constant 0 : index
    %c0_3 = arith.constant 0 : index
    %0 = vector.load %arg3[%c0, %c0_0, %c0_1, %c0_2, %c0_3] : memref<1x1x18x18x4xf32, #tpu.memory_space<vmem>>, vector<1x1x18x18x4xf32>
    %1 = vector.shape_cast %0 : vector<1x1x18x18x4xf32> to vector<18x18x4xf32>
    %cst = arith.constant 0.000000e+00 : f32
    %2 = vector.broadcast %cst : f32 to vector<256x128xf32>
    %3 = vector.extract_strided_slice %1 {offsets = [0, 0, 0], sizes = [16, 16, 4], strides = [1, 1, 1]} : vector<18x18x4xf32> to vector<16x16x4xf32>
    %4 = vector.shape_cast %3 : vector<16x16x4xf32> to vector<256x4xf32>
    %c0_4 = arith.constant 0 : index
    %c0_5 = arith.constant 0 : index
    %c0_6 = arith.constant 0 : index
    %5 = vector.load %arg4[%c0_4, %c0_5, %c0_6] : memref<9x4x128xf32, #tpu.memory_space<vmem>>, vector<1x4x128xf32>
    %6 = vector.shape_cast %5 : vector<1x4x128xf32> to vector<4x128xf32>
    %cst_7 = arith.constant dense<0.000000e+00> : vector<256x128xf32>
    %7 = tpu.matmul %4, %6, %cst_7 {dimension_numbers = #tpu.dot_dimension_numbers<[1], [0], [0], [1], [0, 0, 1, 1], [], []>} : vector<256x4xf32>, vector<4x128xf32>, vector<256x128xf32> -> vector<256x128xf32>
    %8 = arith.addf %2, %7 : vector<256x128xf32>
    %9 = vector.extract_strided_slice %1 {offsets = [0, 1, 0], sizes = [16, 16, 4], strides = [1, 1, 1]} : vector<18x18x4xf32> to vector<16x16x4xf32>
    %10 = vector.shape_cast %9 : vector<16x16x4xf32> to vector<256x4xf32>
    %c1 = arith.constant 1 : index
    %c0_8 = arith.constant 0 : index
    %c0_9 = arith.constant 0 : index
    %11 = vector.load %arg4[%c1, %c0_8, %c0_9] : memref<9x4x128xf32, #tpu.memory_space<vmem>>, vector<1x4x128xf32>
    %12 = vector.shape_cast %11 : vector<1x4x128xf32> to vector<4x128xf32>
    %cst_10 = arith.constant dense<0.000000e+00> : vector<256x128xf32>
    %13 = tpu.matmul %10, %12, %cst_10 {dimension_numbers = #tpu.dot_dimension_numbers<[1], [0], [0], [1], [0, 0, 1, 1], [], []>} : vector<256x4xf32>, vector<4x128xf32>, vector<256x128xf32> -> vector<256x128xf32>
    %14 = arith.addf %8, %13 : vector<256x128xf32>
    %15 = vector.extract_strided_slice %1 {offsets = [0, 2, 0], sizes = [16, 16, 4], strides = [1, 1, 1]} : vector<18x18x4xf32> to vector<16x16x4xf32>
    %16 = vector.shape_cast %15 : vector<16x16x4xf32> to vector<256x4xf32>
    %c2 = arith.constant 2 : index
    %c0_11 = arith.constant 0 : index
    %c0_12 = arith.constant 0 : index
    %17 = vector.load %arg4[%c2, %c0_11, %c0_12] : memref<9x4x128xf32, #tpu.memory_space<vmem>>, vector<1x4x128xf32>
    %18 = vector.shape_cast %17 : vector<1x4x128xf32> to vector<4x128xf32>
    %cst_13 = arith.constant dense<0.000000e+00> : vector<256x128xf32>
    %19 = tpu.matmul %16, %18, %cst_13 {dimension_numbers = #tpu.dot_dimension_numbers<[1], [0], [0], [1], [0, 0, 1, 1], [], []>} : vector<256x4xf32>, vector<4x128xf32>, vector<256x128xf32> -> vector<256x128xf32>
    %20 = arith.addf %14, %19 : vector<256x128xf32>
    %21 = vector.extract_strided_slice %1 {offsets = [1, 0, 0], sizes = [16, 16, 4], strides = [1, 1, 1]} : vector<18x18x4xf32> to vector<16x16x4xf32>
    %22 = vector.shape_cast %21 : vector<16x16x4xf32> to vector<256x4xf32>
    %c3 = arith.constant 3 : index
    %c0_14 = arith.constant 0 : index
    %c0_15 = arith.constant 0 : index
    %23 = vector.load %arg4[%c3, %c0_14, %c0_15] : memref<9x4x128xf32, #tpu.memory_space<vmem>>, vector<1x4x128xf32>
    %24 = vector.shape_cast %23 : vector<1x4x128xf32> to vector<4x128xf32>
    %cst_16 = arith.constant dense<0.000000e+00> : vector<256x128xf32>
    %25 = tpu.matmul %22, %24, %cst_16 {dimension_numbers = #tpu.dot_dimension_numbers<[1], [0], [0], [1], [0, 0, 1, 1], [], []>} : vector<256x4xf32>, vector<4x128xf32>, vector<256x128xf32> -> vector<256x128xf32>
    %26 = arith.addf %20, %25 : vector<256x128xf32>
    %27 = vector.extract_strided_slice %1 {offsets = [1, 1, 0], sizes = [16, 16, 4], strides = [1, 1, 1]} : vector<18x18x4xf32> to vector<16x16x4xf32>
    %28 = vector.shape_cast %27 : vector<16x16x4xf32> to vector<256x4xf32>
    %c4 = arith.constant 4 : index
    %c0_17 = arith.constant 0 : index
    %c0_18 = arith.constant 0 : index
    %29 = vector.load %arg4[%c4, %c0_17, %c0_18] : memref<9x4x128xf32, #tpu.memory_space<vmem>>, vector<1x4x128xf32>
    %30 = vector.shape_cast %29 : vector<1x4x128xf32> to vector<4x128xf32>
    %cst_19 = arith.constant dense<0.000000e+00> : vector<256x128xf32>
    %31 = tpu.matmul %28, %30, %cst_19 {dimension_numbers = #tpu.dot_dimension_numbers<[1], [0], [0], [1], [0, 0, 1, 1], [], []>} : vector<256x4xf32>, vector<4x128xf32>, vector<256x128xf32> -> vector<256x128xf32>
    %32 = arith.addf %26, %31 : vector<256x128xf32>
    %33 = vector.extract_strided_slice %1 {offsets = [1, 2, 0], sizes = [16, 16, 4], strides = [1, 1, 1]} : vector<18x18x4xf32> to vector<16x16x4xf32>
    %34 = vector.shape_cast %33 : vector<16x16x4xf32> to vector<256x4xf32>
    %c5 = arith.constant 5 : index
    %c0_20 = arith.constant 0 : index
    %c0_21 = arith.constant 0 : index
    %35 = vector.load %arg4[%c5, %c0_20, %c0_21] : memref<9x4x128xf32, #tpu.memory_space<vmem>>, vector<1x4x128xf32>
    %36 = vector.shape_cast %35 : vector<1x4x128xf32> to vector<4x128xf32>
    %cst_22 = arith.constant dense<0.000000e+00> : vector<256x128xf32>
    %37 = tpu.matmul %34, %36, %cst_22 {dimension_numbers = #tpu.dot_dimension_numbers<[1], [0], [0], [1], [0, 0, 1, 1], [], []>} : vector<256x4xf32>, vector<4x128xf32>, vector<256x128xf32> -> vector<256x128xf32>
    %38 = arith.addf %32, %37 : vector<256x128xf32>
    %39 = vector.extract_strided_slice %1 {offsets = [2, 0, 0], sizes = [16, 16, 4], strides = [1, 1, 1]} : vector<18x18x4xf32> to vector<16x16x4xf32>
    %40 = vector.shape_cast %39 : vector<16x16x4xf32> to vector<256x4xf32>
    %c6 = arith.constant 6 : index
    %c0_23 = arith.constant 0 : index
    %c0_24 = arith.constant 0 : index
    %41 = vector.load %arg4[%c6, %c0_23, %c0_24] : memref<9x4x128xf32, #tpu.memory_space<vmem>>, vector<1x4x128xf32>
    %42 = vector.shape_cast %41 : vector<1x4x128xf32> to vector<4x128xf32>
    %cst_25 = arith.constant dense<0.000000e+00> : vector<256x128xf32>
    %43 = tpu.matmul %40, %42, %cst_25 {dimension_numbers = #tpu.dot_dimension_numbers<[1], [0], [0], [1], [0, 0, 1, 1], [], []>} : vector<256x4xf32>, vector<4x128xf32>, vector<256x128xf32> -> vector<256x128xf32>
    %44 = arith.addf %38, %43 : vector<256x128xf32>
    %45 = vector.extract_strided_slice %1 {offsets = [2, 1, 0], sizes = [16, 16, 4], strides = [1, 1, 1]} : vector<18x18x4xf32> to vector<16x16x4xf32>
    %46 = vector.shape_cast %45 : vector<16x16x4xf32> to vector<256x4xf32>
    %c7 = arith.constant 7 : index
    %c0_26 = arith.constant 0 : index
    %c0_27 = arith.constant 0 : index
    %47 = vector.load %arg4[%c7, %c0_26, %c0_27] : memref<9x4x128xf32, #tpu.memory_space<vmem>>, vector<1x4x128xf32>
    %48 = vector.shape_cast %47 : vector<1x4x128xf32> to vector<4x128xf32>
    %cst_28 = arith.constant dense<0.000000e+00> : vector<256x128xf32>
    %49 = tpu.matmul %46, %48, %cst_28 {dimension_numbers = #tpu.dot_dimension_numbers<[1], [0], [0], [1], [0, 0, 1, 1], [], []>} : vector<256x4xf32>, vector<4x128xf32>, vector<256x128xf32> -> vector<256x128xf32>
    %50 = arith.addf %44, %49 : vector<256x128xf32>
    %51 = vector.extract_strided_slice %1 {offsets = [2, 2, 0], sizes = [16, 16, 4], strides = [1, 1, 1]} : vector<18x18x4xf32> to vector<16x16x4xf32>
    %52 = vector.shape_cast %51 : vector<16x16x4xf32> to vector<256x4xf32>
    %c8 = arith.constant 8 : index
    %c0_29 = arith.constant 0 : index
    %c0_30 = arith.constant 0 : index
    %53 = vector.load %arg4[%c8, %c0_29, %c0_30] : memref<9x4x128xf32, #tpu.memory_space<vmem>>, vector<1x4x128xf32>
    %54 = vector.shape_cast %53 : vector<1x4x128xf32> to vector<4x128xf32>
    %cst_31 = arith.constant dense<0.000000e+00> : vector<256x128xf32>
    %55 = tpu.matmul %52, %54, %cst_31 {dimension_numbers = #tpu.dot_dimension_numbers<[1], [0], [0], [1], [0, 0, 1, 1], [], []>} : vector<256x4xf32>, vector<4x128xf32>, vector<256x128xf32> -> vector<256x128xf32>
    %56 = arith.addf %50, %55 : vector<256x128xf32>
    %c0_32 = arith.constant 0 : index
    %c0_33 = arith.constant 0 : index
    %57 = vector.load %arg5[%c0_32, %c0_33] : memref<1x128xf32, #tpu.memory_space<vmem>>, vector<1x128xf32>
    %58 = vector.shape_cast %57 : vector<1x128xf32> to vector<128xf32>
    %59 = vector.shape_cast %58 : vector<128xf32> to vector<1x128xf32>
    %60 = vector.broadcast %59 : vector<1x128xf32> to vector<256x128xf32>
    %61 = arith.mulf %56, %60 : vector<256x128xf32>
    %c0_34 = arith.constant 0 : index
    %c0_35 = arith.constant 0 : index
    %62 = vector.load %arg6[%c0_34, %c0_35] : memref<1x128xf32, #tpu.memory_space<vmem>>, vector<1x128xf32>
    %63 = vector.shape_cast %62 : vector<1x128xf32> to vector<128xf32>
    %64 = vector.shape_cast %63 : vector<128xf32> to vector<1x128xf32>
    %65 = vector.broadcast %64 : vector<1x128xf32> to vector<256x128xf32>
    %66 = arith.addf %61, %65 : vector<256x128xf32>
    %cst_36 = arith.constant 0.000000e+00 : f32
    %67 = vector.broadcast %cst_36 : f32 to vector<256x128xf32>
    %68 = arith.maximumf %66, %67 : vector<256x128xf32>
    %69 = vector.shape_cast %68 : vector<256x128xf32> to vector<16x16x128xf32>
    %c0_37 = arith.constant 0 : index
    %c0_38 = arith.constant 0 : index
    %c0_39 = arith.constant 0 : index
    %c0_40 = arith.constant 0 : index
    %70 = vector.load %arg7[%c0_37, %c0_38, %c0_39, %c0_40] : memref<1x16x16x128xf32, #tpu.memory_space<vmem>>, vector<1x16x16x128xf32>
    %71 = vector.shape_cast %70 : vector<1x16x16x128xf32> to vector<16x16x128xf32>
    %72 = vector.shape_cast %69 : vector<16x16x128xf32> to vector<1x16x16x128xf32>
    tpu.vector_store %arg7[%c0_37, %c0_38, %c0_39, %c0_40], %72 {strides = array<i32>} : memref<1x16x16x128xf32, #tpu.memory_space<vmem>>, vector<1x16x16x128xf32>,
    return
  }
  func.func @transform_0(%arg0: i32, %arg1: i32, %arg2: i32) -> (i32, i32, i32, i32, i32) {
    %c0_i32 = arith.constant 0 : i32
    %c0_i32_0 = arith.constant 0 : i32
    %c0_i32_1 = arith.constant 0 : i32
    %c0_i32_2 = arith.constant 0 : i32
    return %arg0, %arg1, %c0_i32, %c0_i32_0, %c0_i32_1 : i32, i32, i32, i32, i32
  }
  func.func @transform_1(%arg0: i32, %arg1: i32, %arg2: i32) -> (i32, i32, i32) {
    %c0_i32 = arith.constant 0 : i32
    %c0_i32_0 = arith.constant 0 : i32
    %c0_i32_1 = arith.constant 0 : i32
    return %c0_i32, %c0_i32_0, %arg2 : i32, i32, i32
  }
  func.func @transform_2(%arg0: i32, %arg1: i32, %arg2: i32) -> (i32, i32) {
    %c0_i32 = arith.constant 0 : i32
    %c0_i32_0 = arith.constant 0 : i32
    return %c0_i32, %arg2 : i32, i32
  }
  func.func @transform_3(%arg0: i32, %arg1: i32, %arg2: i32) -> (i32, i32) {
    %c0_i32 = arith.constant 0 : i32
    %c0_i32_0 = arith.constant 0 : i32
    return %c0_i32, %arg2 : i32, i32
  }
  func.func @transform_4(%arg0: i32, %arg1: i32, %arg2: i32) -> (i32, i32, i32, i32) {
    %c0_i32 = arith.constant 0 : i32
    %c0_i32_0 = arith.constant 0 : i32
    return %arg0, %arg1, %c0_i32, %arg2 : i32, i32, i32, i32
  }
}

</mosaic_0001>

<bundles_post_ra>
// kernel: tpu_custom_call.1
= control target key start
LH: loop header
LB: loop body
LE: loop exit
PB: predicated region body
PF: predicated region fallthrough
CT: control target
= control target key end

     0   :  { %9 = vsyncpa [#allocation3], 0  ;;  %s6210_s0 = inlined_call_operand.vmem [shape: f32[2,1,18,18,4], index: 0, kind: input, shape index: {}]   ;;  %s6211_s1 = inlined_call_operand.vmem [shape: f32[9,4,128], index: 1, kind: input, shape index: {}]   ;;  %s6212_s2 = inlined_call_operand.vmem [shape: f32[1,128], index: 2, kind: input, shape index: {}]   ;;  %s6213_s3 = inlined_call_operand.vmem [shape: f32[1,128], index: 3, kind: input, shape index: {}]   ;;  %s6214_s4 = inlined_call_operand.hbm [shape: f32[2,16,16,128], index: 4, kind: output, shape index: {}]  }
   0x1   :  { %11 = vsyncpa [#allocation3 + $0x1], 0  ;;  %s4859_s15 = smov 0   ;;  %s4861_s16 = smov 0  }
   0x2   :  { %s4863_s17 = smov 0   ;;  %s4865_s18 = smov 0  }
   0x3   :  { %s4867_s19 = smov 0   ;;  %s4869_s20 = smov 0  }
   0x4 LB: > { %s3365_s21 = sadd.s32 4294967295, %s4829_s20   ;;  %s3366_s22 = sadd.s32 4294967294, %s4829_s20   ;;  %s4829_s20 = sphi %s4869_s20, %s17_s20   ;;  %s4825_s19 = sphi %s4867_s19, %s6395_s19   ;;  %s4821_s18 = sphi %s4865_s18, %s6394_s18   ;;  %s4817_s17 = sphi %s4863_s17, %s6393_s17   ;;  %s4813_s16 = sphi %s4861_s16, %s6392_s16   ;;  %s4809_s15 = sphi %s4859_s15, %s6391_s15  }
   0x5   : > { %s36_s23 = sadd.s32 1, %s4825_s19  ;;  %s153_s24 = sadd.s32 1, %s4817_s17 }
   0x6   : > { %p38_p0 = scmp.ge.s32.totalorder %s36_s23, 2  ;;  %p163_p1 = scmp.ne.s32.totalorder %s4817_s17, %s4813_s16 }
   0x7   : > { %p164_p2 = scmp.eq.s32.totalorder %s3365_s21, 1  ;;  %p169_p3 = scmp.ne.s32.totalorder %s4813_s16, %s4809_s15 }
   0x8   : > { %s6397_s23 = smov (%p38_p0, %s36_s23), 0  ;;  %p170_p5 = scmp.eq.s32.totalorder %s3366_s22, 1 }
   0x9   : > { %p4899_p4 = por %p164_p2, %p163_p1  ;;  %s146_s26 = ssub.s32 %s4825_s19, %s6397_s23 }
   0xa   : > { %p3372_p6 = scmp.ge.s32.totalorder %s4829_s20, 1  ;;  %p151_p7 = scmp.eq.s32.totalorder %s146_s26, 0 }
   0xb   : > { %p4906_p8 = por %p170_p5, %p169_p3  ;;  %p219_p9 = scmp.lt.s32.totalorder %s4829_s20, 3 }
   0xc   : > { %s4912_s28 = scalar_select %p151_p7, %s4817_s17, %s153_s24  }
   0xd   : > { %p220_p10 = pnand %p3372_p6, %p219_p9 }
   0xf   : > { %223 = sbr.rel (%p220_p10) target bundleno = 555 (0x22b), region = 36 }
  0x16   : > { %v3375_v0 = vld [vmem:[%s6211_s1 + $0x4] sm:$0xf]  ;;  %vm530_vm0 = vcmask 1043456   ;;  %v4920_v1 = vld [vmem:[%s6211_s1 + $0x10] sm:$0xf]  ;;  %p259_p11 = scmp.lt.s32.totalorder %s4821_s18, 1 }
  0x17   : > { %3985 = vmatprep.subr.msk.mxu1 %vm530_vm0, %v3375_v0  ;;  %4185 = vmatprep.subr.msk.mxu0 %vm530_vm0, %v4920_v1  ;;  %v333_v2 = vld [vmem:[%s6211_s1] sm:$0xf]  ;;  %v3544_v3 = vld [vmem:[%s6211_s1 + $0x14] sm:$0xf]  ;;  %vm382_vm1 = vcmask 1046528   ;;  %vm465_vm2 = vcmask 31744  }
  0x18   : > { %3986 = vmatpush3.msk.msra.mxu1 %vm530_vm0, %v3375_v0  ;;  %4186 = vmatpush3.msk.msra.mxu0 %vm530_vm0, %v4920_v1  ;;  %s260_s11 = scalar_select %p259_p11, %s4821_s18, 1  ;;  %v5006_v33 = vld [vmem:[%s6211_s1 + $0x18] sm:$0xf]  ;;  %v5016_v35 = vld [vmem:[%s6211_s1 + $0x8] sm:$0xf]  ;;  %vm1051_vm3 = vcmask 1045504  }
  0x19   : > { %4035 = vmatprep.subr.msk.mxu1 %vm530_vm0, %v333_v2  ;;  %4235 = vmatprep.subr.msk.mxu0 %vm530_vm0, %v3544_v3  ;;  %s256_s10 = sand.u32 1, %s4813_s16   ;;  %s3687_s24 = sshll.u32 %s4821_s18, 12 }
  0x1a   : > { %s4693_s12 = smul.u32 432, %s260_s11  ;;  %s6156_s5 = scalar_lea.hbm %s6214_s4, %s3687_s24 }
  0x1b   : > { %s6164_s18 = scalar_lea.sflag [#allocation3], %s256_s10  ;;  %s4831_s7 = smov [#allocation2]  }
  0x1c   : > { %s4941_s21 = scalar_lea.vmem %s6210_s0, %s4693_s12  ;;  %s4755_s8 = sshll.u32 %s4831_s7, 4  ;;  %s4756_s8 = int_to_ptr.vmem [resolvable:$false] %s4755_s8 }
  0x1d   : > { %v4944_v4 = vld [vmem:[%s4941_s21] sm:$0xff]  ;;  %v4947_v5 = vld [vmem:[%s4941_s21 + $0x8] sm:$0xff]  ;;  %v4950_v6 = vld [vmem:[%s4941_s21 + $0x18] sm:$0xff]  ;;  %s4757_s9 = scalar_lea.vmem %s4756_s8, 8192 }
  0x1e   : > { %6290 = vst [vmem:[#allocation5_spill] sm:$0xff] %v4950_v6  ;;  %v383_v7 = vrot.slane %v4944_v4, 1  ;;  %v384_v8 = vrot.slane %v4947_v5, 1  ;;  %v4955_v9 = vld [vmem:[%s4941_s21 + $0x20] sm:$0xff]  ;;  %v388_v10 = vrot.slane %v4950_v6, 1  ;;  %v4967_v15 = vld [vmem:[%s4941_s21 + $0x30] sm:$0xff] }
  0x1f   : > { %6291 = vst [vmem:[#allocation6_spill] sm:$0xff] %v4955_v9  ;;  %v4959_v11 = vld [vmem:[%s4941_s21 + $0x10] sm:$0x3]  ;;  %v389_v12 = vrot.slane %v4955_v9, 1  ;;  %v4964_v14 = vld [vmem:[%s4941_s21 + $0x28] sm:$0x3] }
  0x20   : > { %v386_v13 = vrot.slane %v4959_v11, 1  ;;  %v385_v16 = vsel %vm382_vm1, %v383_v7, %v384_v8  ;;  %v391_v17 = vrot.slane %v4964_v14, 1  ;;  %v4972_v18 = vld [vmem:[%s4941_s21 + $0x38] sm:$0xff]  ;;  %v393_v19 = vrot.slane %v4967_v15, 1  ;;  %v4976_v20 = vld [vmem:[%s4941_s21 + $0x40] sm:$0x3] }
  0x21   : > { %3987 = vmatprep.mubr.msk.f32.mxu1 %vm465_vm2, %v385_v16  ;;  %v390_v21 = vsel %vm382_vm1, %v388_v10, %v389_v12  ;;  %v394_v23 = vrot.slane %v4972_v18, 1  ;;  %v396_v24 = vrot.slane %v4976_v20, 1  ;;  %v4984_v25 = vld [vmem:[%s4941_s21 + $0x48] sm:$0xff]  ;;  %v4987_v26 = vld [vmem:[%s4941_s21 + $0x50] sm:$0xff]  ;;  %v4990_v27 = vld [vmem:[%s4941_s21 + $0x58] sm:$0x3] }
  0x22   : > { %v387_v22 = vsel %vm382_vm1, %v384_v8, %v386_v13  ;;  %4187 = vmatprep.mubr.msk.f32.mxu0 %vm465_vm2, %v390_v21  ;;  %v392_v28 = vsel %vm382_vm1, %v389_v12, %v391_v17  ;;  %v398_v29 = vrot.slane %v4984_v25, 1  ;;  %v399_v30 = vrot.slane %v4987_v26, 1  ;;  %v4998_v31 = vld [vmem:[%s4941_s21 + $0x60] sm:$0xff]  ;;  %v5001_v32 = vld [vmem:[%s4941_s21 + $0x68] sm:$0xff]  ;;  %v5032_v41 = vld [vmem:[%s4941_s21 + $0x70] sm:$0x3] }
  0x23   : > { %3988 = vmatmul.mubr.msk.f32.vlgmr.msra.gmra.mrb[0].mxu1 %vm465_vm2, %v387_v22  ;;  %4188 = vmatmul.mubr.msk.f32.vlgmr.msra.gmra.mrb[0].mxu0 %vm465_vm2, %v392_v28  ;;  %v5011_v34 = vsel %vm382_vm1, %v393_v19, %v394_v23  ;;  %v5021_v36 = vsel %vm382_vm1, %v394_v23, %v396_v24  ;;  %v401_v37 = vrot.slane %v4990_v27, 1  ;;  %v403_v39 = vrot.slane %v4998_v31, 1  ;;  %v5038_v42 = vld [vmem:[%s4941_s21 + $0x78] sm:$0xff]  ;;  %v5041_v43 = vld [vmem:[%s4941_s21 + $0x80] sm:$0xff]  ;;  %v5061_v49 = vld [vmem:[%s4941_s21 + $0x88] sm:$0x3] }
  0x24   : > { %4036 = vmatpush3.msk.msra.mxu1 %vm530_vm0, %v333_v2  ;;  %6292 = vst [vmem:[#allocation7_spill] sm:$0xff] %v5011_v34  ;;  %4236 = vmatpush3.msk.msra.mxu0 %vm530_vm0, %v3544_v3  ;;  %6293 = vst [vmem:[#allocation8_spill] sm:$0xff] %v5021_v36  ;;  %v5027_v38 = vsel %vm382_vm1, %v398_v29, %v399_v30  ;;  %v404_v40 = vrot.slane %v5001_v32, 1  ;;  %v406_v45 = vrot.slane %v5032_v41, 1  ;;  %v408_v47 = vrot.slane %v5038_v42, 1  ;;  %v5066_v50 = vld [vmem:[%s4941_s21 + $0x90] sm:$0xff] }
  0x25   : > { %3990 = vmatprep.mubr.msk.f32.mxu1 %vm465_vm2, %v390_v21  ;;  %4190 = vmatprep.mubr.msk.f32.mxu0 %vm465_vm2, %v5011_v34  ;;  %6294 = vst [vmem:[#allocation9_spill] sm:$0xff] %v5027_v38  ;;  %v5052_v44 = vsel %vm382_vm1, %v399_v30, %v401_v37  ;;  %v409_v48 = vrot.slane %v5041_v43, 1  ;;  %v5069_v51 = vld [vmem:[%s4941_s21 + $0x98] sm:$0xff]  ;;  %v411_v53 = vrot.slane %v5061_v49, 1  ;;  %v413_v55 = vrot.slane %v5066_v50, 1  ;;  %v5092_v58 = vld [vmem:[%s4941_s21 + $0xa8] sm:$0xff] }
  0x26   : > { %4285 = vmatprep.subr.msk.mxu0 %vm530_vm0, %v5006_v33  ;;  %4085 = vmatprep.subr.msk.mxu1 %vm530_vm0, %v5016_v35  ;;  %6295 = vst [vmem:[#allocation10_spill] sm:$0xff] %v5052_v44  ;;  %v5056_v46 = vsel %vm382_vm1, %v403_v39, %v404_v40  ;;  %v5078_v52 = vsel %vm382_vm1, %v404_v40, %v406_v45  ;;  %v414_v56 = vrot.slane %v5069_v51, 1  ;;  %v5087_v57 = vld [vmem:[%s4941_s21 + $0xa0] sm:$0x3]  ;;  %v5095_v59 = vld [vmem:[%s4941_s21 + $0xb0] sm:$0xff]  ;;  %v418_v63 = vrot.slane %v5092_v58, 1 }
  0x27   : > { %3991 = vmatmul.mubr.msk.f32.gmra.mrb[2].mxu1 %vm465_vm2, %v392_v28  ;;  %4191 = vmatmul.mubr.msk.f32.gmra.mrb[2].mxu0 %vm465_vm2, %v5021_v36  ;;  %6296 = vst [vmem:[#allocation11_spill] sm:$0xff] %v5056_v46  ;;  %6297 = vst [vmem:[#allocation12_spill] sm:$0xff] %v5078_v52  ;;  %v5082_v54 = vsel %vm382_vm1, %v408_v47, %v409_v48  ;;  %v5104_v60 = vsel %vm382_vm1, %v409_v48, %v411_v53  ;;  %v416_v61 = vrot.slane %v5087_v57, 1  ;;  %v5113_v2 = vld [vmem:[%s4941_s21 + $0xb8] sm:$0x3]  ;;  %v5118_v3 = vld [vmem:[%s4941_s21 + $0xc0] sm:$0xff] }
  0x28   : > { %3993 = vmatprep.mubr.msk.f32.mxu1 %vm465_vm2, %v5011_v34  ;;  %4193 = vmatprep.mubr.msk.f32.mxu0 %vm465_vm2, %v5027_v38  ;;  %6298 = vst [vmem:[#allocation13_spill] sm:$0xff] %v5082_v54  ;;  %6299 = vst [vmem:[#allocation14_spill] sm:$0xff] %v5104_v60  ;;  %v5108_v62 = vsel %vm382_vm1, %v413_v55, %v414_v56  ;;  %v419_v0 = vrot.slane %v5095_v59, 1  ;;  %v5121_v7 = vld [vmem:[%s4941_s21 + $0xc8] sm:$0xff]  ;;  %v421_v10 = vrot.slane %v5113_v2, 1  ;;  %v423_v13 = vrot.slane %v5118_v3, 1 }
  0x29   : > { %6300 = vst [vmem:[#allocation15_spill] sm:$0xff] %v5108_v62  ;;  %v5130_v8 = vsel %vm382_vm1, %v414_v56, %v416_v61  ;;  %v424_v16 = vrot.slane %v5121_v7, 1  ;;  %v5139_v17 = vld [vmem:[%s4941_s21 + $0xd0] sm:$0x3]  ;;  %v1057_v23 = vrot.slane %v4950_v6, 2  ;;  %v1058_v24 = vrot.slane %v4955_v9, 2 }
  0x2a   : > { %6301 = vst [vmem:[#allocation16_spill] sm:$0xff] %v5130_v8  ;;  %v5134_v12 = vsel %vm382_vm1, %v418_v63, %v419_v0  ;;  %v5150_v19 = vsel %vm382_vm1, %v419_v0, %v421_v10  ;;  %v426_v21 = vrot.slane %v5139_v17, 1  ;;  %v5159_v28 = vld [vmem:[%s4941_s21 + $0xd8] sm:$0xff]  ;;  %v5162_v29 = vld [vmem:[%s4941_s21 + $0xe0] sm:$0xff]  ;;  %v1060_v30 = vrot.slane %v4964_v14, 2  ;;  %v5187_v53 = vld [vmem:[%s4941_s21 + $0xf0] sm:$0xff] }
  0x2b   : > { %3994 = vmatmul.mubr.msk.f32.gmra.mrb[4].mxu1 %vm465_vm2, %v5021_v36  ;;  %4194 = vmatmul.mubr.msk.f32.gmra.mrb[4].mxu0 %vm465_vm2, %v5052_v44  ;;  %6302 = vst [vmem:[#allocation17_spill] sm:$0xff] %v5134_v12  ;;  %6303 = vst [vmem:[#allocation18_spill] sm:$0xff] %v5150_v19  ;;  %v5154_v22 = vsel %vm382_vm1, %v423_v13, %v424_v16  ;;  %v428_v39 = vrot.slane %v5159_v28, 1  ;;  %v429_v40 = vrot.slane %v5162_v29, 1  ;;  %v5179_v45 = vld [vmem:[%s4941_s21 + $0xe8] sm:$0x3] }
  0x2c   : > { %3996 = vmatprep.mubr.msk.f32.mxu1 %vm465_vm2, %v5027_v38  ;;  %4196 = vmatprep.mubr.msk.f32.mxu0 %vm465_vm2, %v5056_v46  ;;  %6304 = vst [vmem:[#allocation19_spill] sm:$0xff] %v5154_v22  ;;  %v5174_v37 = vsel %vm382_vm1, %v424_v16, %v426_v21  ;;  %v5182_v47 = vsel %vm1051_vm3, %v1057_v23, %v1058_v24  ;;  %v1062_v48 = vrot.slane %v4967_v15, 2  ;;  %v1063_v14 = vrot.slane %v4972_v18, 2  ;;  %v5190_v55 = vld [vmem:[%s4941_s21 + $0xf8] sm:$0xff]  ;;  %v5211_v16 = vld [vmem:[%s4941_s21 + $0x100] sm:$0x3] }
  0x2d   : > { %6305 = vst [vmem:[#allocation20_spill] sm:$0xff] %v5174_v37  ;;  %v431_v56 = vrot.slane %v5179_v45, 1  ;;  %v1065_v61 = vrot.slane %v4976_v20, 2  ;;  %v5203_v63 = vsel %vm1051_vm3, %v1058_v24, %v1060_v30  ;;  %v5206_v0 = vsel %vm382_vm1, %v428_v39, %v429_v40  ;;  %v5222_v24 = vld [vmem:[%s4941_s21 + $0x110] sm:$0xff]  ;;  %v5229_v30 = vld [vmem:[%s6211_s1 + $0x1c] sm:$0xf] }
  0x2e   : > { %6306 = vst [vmem:[#allocation21_spill] sm:$0xff] %v5206_v0  ;;  %v433_v10 = vrot.slane %v5187_v53, 1  ;;  %v434_v13 = vrot.slane %v5190_v55, 1  ;;  %v5214_v21 = vsel %vm1051_vm3, %v1062_v48, %v1063_v14  ;;  %v1067_v20 = vrot.slane %v4984_v25, 2  ;;  %v5325_v36 = vld [vmem:[%s4941_s21 + $0x148] sm:$0x3] }
  0x2f   : > { %3997 = vmatmul.mubr.msk.f32.gmra.mrb[6].mxu1 %vm465_vm2, %v5052_v44  ;;  %4197 = vmatmul.mubr.msk.f32.gmra.mrb[6].mxu0 %vm465_vm2, %v5078_v52  ;;  %v1068_v23 = vrot.slane %v4987_v26, 2  ;;  %v5236_v39 = vsel %vm382_vm1, %v429_v40, %v431_v56  ;;  %v5239_v48 = vsel %vm1051_vm3, %v1063_v14, %v1065_v61  ;;  %v439_v40 = vrot.slane %v5222_v24, 1  ;;  %v5253_v56 = vld [vmem:[%s4941_s21 + $0x118] sm:$0x3] }
  0x30   : > { %3999 = vmatprep.mubr.msk.f32.mxu1 %vm465_vm2, %v5056_v46  ;;  %4199 = vmatprep.mubr.msk.f32.mxu0 %vm465_vm2, %v5082_v54  ;;  %6307 = vst [vmem:[#allocation22_spill] sm:$0xff] %v5236_v39  ;;  %6308 = vst [vmem:[#allocation23_spill] sm:$0xff] %v5239_v48  ;;  %v1072_v61 = vrot.slane %v4998_v31, 2  ;;  %v5298_v46 = vld [vmem:[%s4941_s21 + $0x138] sm:$0xff]  ;;  %v1080_v44 = vrot.slane %v5061_v49, 2  ;;  %v1085_v34 = vrot.slane %v5087_v57, 2 }
  0x31   : > { %v5256_v14 = vsel %vm1051_vm3, %v1067_v20, %v1068_v23  ;;  %v441_v20 = vrot.slane %v5253_v56, 1  ;;  %v448_v38 = vrot.slane %v5298_v46, 1  ;;  %v1087_v57 = vrot.slane %v5092_v58, 2 }
  0x32   : > { %6310 = vst [vmem:[#allocation25_spill] sm:$0xff] %v5256_v14 }
  0x33   : > { %4000 = vmatmul.mubr.msk.f32.gmra.mrb[8].mxu1 %vm465_vm2, %v5078_v52  ;;  %4200 = vmatmul.mubr.msk.f32.gmra.mrb[8].mxu0 %vm465_vm2, %v5104_v60  ;;  %v5290_v52 = vld [vmem:[%s4941_s21 + $0x130] sm:$0x3] }
  0x34   : > { %4002 = vmatprep.mubr.msk.f32.mxu1 %vm465_vm2, %v5082_v54  ;;  %4202 = vmatprep.mubr.msk.f32.mxu0 %vm465_vm2, %v5108_v62 }
  0x37   : > { %4003 = vmatmul.mubr.msk.f32.gmra.mrb[10].mxu1 %vm465_vm2, %v5104_v60  ;;  %4203 = vmatmul.mubr.msk.f32.gmra.mrb[10].mxu0 %vm465_vm2, %v5130_v8 }
  0x38   : > { %4005 = vmatprep.mubr.msk.f32.mxu1 %vm465_vm2, %v5108_v62  ;;  %4205 = vmatprep.mubr.msk.f32.mxu0 %vm465_vm2, %v5134_v12  ;;  %v1075_v62 = vrot.slane %v5032_v41, 2  ;;  %v1077_v41 = vrot.slane %v5038_v42, 2 }
  0x3b   : > { %4006 = vmatmul.mubr.msk.f32.gmra.mrb[12].mxu1 %vm465_vm2, %v5130_v8  ;;  %4206 = vmatmul.mubr.msk.f32.gmra.mrb[12].mxu0 %vm465_vm2, %v5150_v19  ;;  %v5261_v8 = vld [vmem:[%s4941_s21 + $0x120] sm:$0xff] }
  0x3c   : > { %4008 = vmatprep.mubr.msk.f32.mxu1 %vm465_vm2, %v5134_v12  ;;  %4208 = vmatprep.mubr.msk.f32.mxu0 %vm465_vm2, %v5154_v22  ;;  %v1070_v12 = vrot.slane %v4990_v27, 2  ;;  %v443_v54 = vrot.slane %v5261_v8, 1 }
  0x3e   : > { %v5282_v60 = vsel %vm1051_vm3, %v1068_v23, %v1070_v12  ;;  %v5301_v12 = vld [vmem:[%s4941_s21 + $0x140] sm:$0xff] }
  0x3f   : > { %4009 = vmatmul.mubr.msk.f32.gmra.mrb[14].mxu1 %vm465_vm2, %v5150_v19  ;;  %4209 = vmatmul.mubr.msk.f32.gmra.mrb[14].mxu0 %vm465_vm2, %v5174_v37  ;;  %v5247_v19 = vsel %vm382_vm1, %v433_v10, %v434_v13  ;;  %v5264_v10 = vld [vmem:[%s4941_s21 + $0x128] sm:$0xff]  ;;  %6312 = vst [vmem:[#allocation27_spill] sm:$0xff] %v5282_v60 }
  0x40   : > { %4011 = vmatprep.mubr.msk.f32.mxu1 %vm465_vm2, %v5154_v22  ;;  %4237 = vmatprep.mubr.msk.f32.mxu0 %vm465_vm2, %v5182_v47  ;;  %v5219_v22 = vld [vmem:[%s4941_s21 + $0x108] sm:$0xff]  ;;  %6309 = vst [vmem:[#allocation24_spill] sm:$0xff] %v5247_v19 }
  0x43   : > { %4012 = vmatmul.mubr.msk.f32.gmra.mrb[16].mxu1 %vm465_vm2, %v5174_v37  ;;  %4238 = vmatmul.mubr.msk.f32.vlgmr.msra.gmra.mrb[0].mxu0 %vm465_vm2, %v5203_v63  ;;  %v436_v37 = vrot.slane %v5211_v16, 1 }
  0x44   : > { %4014 = vmatprep.mubr.msk.f32.mxu1 %vm465_vm2, %v5206_v0  ;;  %4286 = vmatpush3.msk.msra.mxu0 %vm530_vm0, %v5006_v33  ;;  %v438_v0 = vrot.slane %v5219_v22, 1  ;;  %v1073_v33 = vrot.slane %v5001_v32, 2 }
  0x45   : > { %4240 = vmatprep.mubr.msk.f32.mxu0 %vm465_vm2, %v5214_v21  ;;  %4335 = vmatprep.subr.msk.mxu0 %vm530_vm0, %v5229_v30  ;;  %v5275_v27 = vsel %vm382_vm1, %v434_v13, %v436_v37  ;;  %v1078_v13 = vrot.slane %v5041_v43, 2 }
  0x46   : > { %6311 = vst [vmem:[#allocation26_spill] sm:$0xff] %v5275_v27  ;;  %v5293_v37 = vsel %vm1051_vm3, %v1072_v61, %v1073_v33  ;;  %v5313_v23 = vsel %vm1051_vm3, %v1073_v33, %v1075_v62  ;;  %v446_v61 = vrot.slane %v5290_v52, 1  ;;  %v1082_v62 = vrot.slane %v5066_v50, 2 }
  0x47   : > { %4015 = vmatmul.mubr.msk.f32.gmra.mrb[18].mxu1 %vm465_vm2, %v5236_v39  ;;  %4241 = vmatmul.mubr.msk.f32.gmra.mrb[2].mxu0 %vm465_vm2, %v5239_v48  ;;  %v5285_v39 = vsel %vm382_vm1, %v438_v0, %v439_v40  ;;  %6314 = vst [vmem:[#allocation29_spill] sm:$0xff] %v5293_v37  ;;  %v5310_v0 = vsel %vm382_vm1, %v439_v40, %v441_v20  ;;  %6316 = vst [vmem:[#allocation31_spill] sm:$0xff] %v5313_v23  ;;  %v1083_v33 = vrot.slane %v5069_v51, 2  ;;  %v5333_v20 = vld [vmem:[%s4941_s21 + $0x150] sm:$0xff]  ;;  %v5395_v48 = vld [vmem:[%s4941_s21 + $0x178] sm:$0x3] }
  0x48   : > { %4017 = vmatprep.mubr.msk.f32.mxu1 %vm465_vm2, %v5247_v19  ;;  %4243 = vmatprep.mubr.msk.f32.mxu0 %vm465_vm2, %v5256_v14  ;;  %6313 = vst [vmem:[#allocation28_spill] sm:$0xff] %v5285_v39  ;;  %v444_v19 = vrot.slane %v5264_v10, 1  ;;  %6315 = vst [vmem:[#allocation30_spill] sm:$0xff] %v5310_v0  ;;  %v5328_v40 = vsel %vm1051_vm3, %v1077_v41, %v1078_v13  ;;  %v451_v41 = vrot.slane %v5325_v36, 1 }
  0x49   : > { %6318 = vst [vmem:[#allocation33_spill] sm:$0xff] %v5328_v40 }
  0x4a   : > { %v5345_v49 = vsel %vm382_vm1, %v444_v19, %v446_v61  ;;  %v1088_v61 = vrot.slane %v5095_v59, 2 }
  0x4b   : > { %4018 = vmatmul.mubr.msk.f32.gmra.mrb[20].mxu1 %vm465_vm2, %v5275_v27  ;;  %4244 = vmatmul.mubr.msk.f32.gmra.mrb[4].mxu0 %vm465_vm2, %v5282_v60  ;;  %v5319_v27 = vsel %vm382_vm1, %v443_v54, %v444_v19  ;;  %v5336_v54 = vld [vmem:[%s4941_s21 + $0x158] sm:$0xff]  ;;  %6319 = vst [vmem:[#allocation34_spill] sm:$0xff] %v5345_v49  ;;  %v5360_v60 = vld [vmem:[%s4941_s21 + $0x160] sm:$0x3]  ;;  %v5363_v19 = vsel %vm1051_vm3, %v1082_v62, %v1083_v33 }
  0x4c   : > { %4020 = vmatprep.mubr.msk.f32.mxu1 %vm465_vm2, %v5285_v39  ;;  %4246 = vmatprep.mubr.msk.f32.mxu0 %vm465_vm2, %v5293_v37  ;;  %6317 = vst [vmem:[#allocation32_spill] sm:$0xff] %v5319_v27  ;;  %v449_v39 = vrot.slane %v5301_v12, 1  ;;  %v5352_v37 = vsel %vm1051_vm3, %v1078_v13, %v1080_v44  ;;  %v5371_v44 = vld [vmem:[%s4941_s21 + $0x170] sm:$0xff]  ;;  %v5383_v13 = vsel %vm1051_vm3, %v1083_v33, %v1085_v34  ;;  %v456_v62 = vrot.slane %v5360_v60, 1 }
  0x4d   : > { %6320 = vst [vmem:[#allocation35_spill] sm:$0xff] %v5352_v37  ;;  %6322 = vst [vmem:[#allocation37_spill] sm:$0xff] %v5371_v44  ;;  %v1092_v34 = vrot.slane %v5118_v3, 2  ;;  %v1093_v33 = vrot.slane %v5121_v7, 2 }
  0x4e   : > { %6324 = vst [vmem:[#allocation39_spill] sm:$0xff] %v5383_v13 }
  0x4f   : > { %4021 = vmatmul.mubr.msk.f32.gmra.mrb[22].mxu1 %vm465_vm2, %v5310_v0  ;;  %4247 = vmatmul.mubr.msk.f32.gmra.mrb[6].mxu0 %vm465_vm2, %v5313_v23  ;;  %v5355_v0 = vsel %vm382_vm1, %v448_v38, %v449_v39  ;;  %v453_v23 = vrot.slane %v5333_v20, 1  ;;  %v5380_v38 = vsel %vm382_vm1, %v449_v39, %v451_v41  ;;  %v5398_v39 = vsel %vm1051_vm3, %v1087_v57, %v1088_v61 }
  0x50   : > { %4023 = vmatprep.mubr.msk.f32.mxu1 %vm465_vm2, %v5319_v27  ;;  %4249 = vmatprep.mubr.msk.f32.mxu0 %vm465_vm2, %v5328_v40  ;;  %6321 = vst [vmem:[#allocation36_spill] sm:$0xff] %v5355_v0  ;;  %v454_v27 = vrot.slane %v5336_v54, 1  ;;  %v5368_v40 = vld [vmem:[%s4941_s21 + $0x168] sm:$0xff]  ;;  %6323 = vst [vmem:[#allocation38_spill] sm:$0xff] %v5380_v38 }
  0x52   : > { %v5389_v14 = vsel %vm382_vm1, %v453_v23, %v454_v27  ;;  %v461_v23 = vrot.slane %v5395_v48, 1 }
  0x53   : > { %4024 = vmatmul.mubr.msk.f32.gmra.mrb[24].mxu1 %vm465_vm2, %v5345_v49  ;;  %4250 = vmatmul.mubr.msk.f32.gmra.mrb[8].mxu0 %vm465_vm2, %v5352_v37  ;;  %6325 = vst [vmem:[#allocation40_spill] sm:$0xff] %v5389_v14  ;;  %v1090_v49 = vrot.slane %v5113_v2, 2  ;;  %v458_v37 = vrot.slane %v5368_v40, 1  ;;  %v5409_v2 = vsel %vm382_vm1, %v454_v27, %v456_v62  ;;  %v1098_v27 = vrot.slane %v5162_v29, 2 }
  0x54   : > { %4026 = vmatprep.mubr.msk.f32.mxu1 %vm465_vm2, %v5355_v0  ;;  %4252 = vmatprep.mubr.msk.f32.mxu0 %vm465_vm2, %v5363_v19  ;;  %v459_v0 = vrot.slane %v5371_v44, 1  ;;  %6326 = vst [vmem:[#allocation41_spill] sm:$0xff] %v5409_v2  ;;  %v1102_v62 = vrot.slane %v5187_v53, 2 }
  0x55   : > { %v5415_v41 = vsel %vm1051_vm3, %v1088_v61, %v1090_v49  ;;  %v1100_v49 = vrot.slane %v5179_v45, 2 }
  0x56   : > { %v5418_v57 = vsel %vm382_vm1, %v458_v37, %v459_v0  ;;  %v5433_v37 = vsel %vm382_vm1, %v459_v0, %v461_v23  ;;  %v5468_v23 = vld [vmem:[%s6211_s1 + $0xc] sm:$0xf] }
  0x57   : > { %4027 = vmatmul.mubr.msk.f32.gmra.mrb[26].mxu1 %vm465_vm2, %v5380_v38  ;;  %4253 = vmatmul.mubr.msk.f32.gmra.mrb[10].mxu0 %vm465_vm2, %v5383_v13  ;;  %6327 = vst [vmem:[#allocation42_spill] sm:$0xff] %v5418_v57  ;;  %v1095_v38 = vrot.slane %v5139_v17, 2  ;;  %v5422_v13 = vsel %vm1051_vm3, %v1092_v34, %v1093_v33  ;;  %6328 = vst [vmem:[#allocation43_spill] sm:$0xff] %v5433_v37  ;;  %v1103_v34 = vrot.slane %v5190_v55, 2 }
  0x58   : > { %4029 = vmatprep.mubr.msk.f32.mxu1 %vm465_vm2, %v5389_v14  ;;  %4255 = vmatprep.mubr.msk.f32.mxu0 %vm465_vm2, %v5398_v39  ;;  %v1097_v14 = vrot.slane %v5159_v28, 2  ;;  %v5455_v45 = vsel %vm1051_vm3, %v1098_v27, %v1100_v49 }
  0x59   : > { %v5438_v17 = vsel %vm1051_vm3, %v1093_v33, %v1095_v38  ;;  %v5459_v0 = vsel %vm1051_vm3, %v1102_v62, %v1103_v34  ;;  %v1107_v38 = vrot.slane %v5219_v22, 2  ;;  %v1108_v33 = vrot.slane %v5222_v24, 2 }
  0x5a   : > { %v5442_v61 = vsel %vm1051_vm3, %v1097_v14, %v1098_v27  ;;  %v1105_v14 = vrot.slane %v5211_v16, 2  ;;  %v1110_v27 = vrot.slane %v5253_v56, 2  ;;  %v1112_v62 = vrot.slane %v5261_v8, 2 }
  0x5b   : > { %4030 = vmatmul.mubr.msk.f32.gmra.mrb[28].mxu1 %vm465_vm2, %v5409_v2  ;;  %4256 = vmatmul.mubr.msk.f32.gmra.mrb[12].mxu0 %vm465_vm2, %v5415_v41  ;;  %v5483_v49 = vsel %vm1051_vm3, %v1107_v38, %v1108_v33  ;;  %v1117_v38 = vrot.slane %v5298_v46, 2  ;;  %v1128_v2 = vrot.slane %v5371_v44, 2 }
  0x5c   : > { %4032 = vmatprep.mubr.msk.f32.mxu1 %vm465_vm2, %v5418_v57  ;;  %4258 = vmatprep.mubr.msk.f32.mxu0 %vm465_vm2, %v5422_v13  ;;  %v5479_v16 = vsel %vm1051_vm3, %v1103_v34, %v1105_v14  ;;  %6329 = vst [vmem:[#allocation44_spill] sm:$0xff] %v5483_v49  ;;  %v5498_v56 = vsel %vm1051_vm3, %v1108_v33, %v1110_v27  ;;  %v1115_v34 = vrot.slane %v5290_v52, 2  ;;  %v1120_v33 = vrot.slane %v5325_v36, 2 }
  0x5d   : > { %v1123_v57 = vrot.slane %v5336_v54, 2 }
  0x5f   : > { %4033 = vmatmul.mubr.msk.f32.gmra.mrb[30].mxu1 %vm465_vm2, %v5433_v37  ;;  %4259 = vmatmul.mubr.msk.f32.gmra.mrb[14].mxu0 %vm465_vm2, %v5438_v17  ;;  %v1118_v37 = vrot.slane %v5301_v12, 2 }
  0x60   : > { %4037 = vmatprep.mubr.msk.f32.mxu1 %vm465_vm2, %v4944_v4  ;;  %4261 = vmatprep.mubr.msk.f32.mxu0 %vm465_vm2, %v5442_v61 }
  0x61   : > { %v5519_v27 = vsel %vm1051_vm3, %v1117_v38, %v1118_v37  ;;  %v5532_v36 = vsel %vm1051_vm3, %v1118_v37, %v1120_v33  ;;  %v1127_v38 = vrot.slane %v5368_v40, 2  ;;  %v1130_v37 = vrot.slane %v5395_v48, 2 }
  0x62   : > { %6331 = vst [vmem:[#allocation46_spill] sm:$0xff] %v5519_v27  ;;  %6332 = vst [vmem:[#allocation47_spill] sm:$0xff] %v5532_v36 }
  0x63   : > { %4038 = vmatmul.mubr.msk.f32.vlgmr.msra.gmra.mrb[0].mxu1 %vm465_vm2, %v4947_v5  ;;  %4262 = vmatmul.mubr.msk.f32.gmra.mrb[16].mxu0 %vm465_vm2, %v5455_v45  ;;  %v5559_v33 = vsel %vm1051_vm3, %v1127_v38, %v1128_v2  ;;  %v5575_v48 = vsel %vm1051_vm3, %v1128_v2, %v1130_v37  ;;  %v1053_v38 = vrot.slane %v4947_v5, 2  ;;  %v1055_v37 = vrot.slane %v4959_v11, 2  ;;  %v6339_v5 = vld [vmem:[#allocation23_spill] sm:$0xff]  ;;  %v6340_v11 = vld [vmem:[#allocation25_spill] sm:$0xff] }
  0x64   : > { %4086 = vmatpush3.msk.msra.mxu1 %vm530_vm0, %v5016_v35  ;;  %4040 = vmatprep.mubr.msk.f32.mxu1 %vm465_vm2, %v4950_v6  ;;  %v1113_v35 = vrot.slane %v5264_v10, 2  ;;  %v5546_v6 = vld [vmem:[%s4941_s21 + $0x188] sm:$0xff]  ;;  %6335 = vst [vmem:[#allocation50_spill] sm:$0xff] %v5559_v33  ;;  %6336 = vst [vmem:[#allocation51_spill] sm:$0xff] %v5575_v48 }
  0x65   : > { %4264 = vmatprep.mubr.msk.f32.mxu0 %vm465_vm2, %v5459_v0  ;;  %4135 = vmatprep.subr.msk.mxu1 %vm530_vm0, %v5468_v23 }
  0x66   : > { %v5502_v14 = vsel %vm1051_vm3, %v1112_v62, %v1113_v35  ;;  %v5515_v52 = vsel %vm1051_vm3, %v1113_v35, %v1115_v34  ;;  %v1122_v62 = vrot.slane %v5333_v20, 2  ;;  %v1125_v35 = vrot.slane %v5360_v60, 2 }
  0x67   : > { %4041 = vmatmul.mubr.msk.f32.gmra.mrb[2].mxu1 %vm465_vm2, %v4955_v9  ;;  %4265 = vmatmul.mubr.msk.f32.gmra.mrb[18].mxu0 %vm465_vm2, %v5479_v16  ;;  %6330 = vst [vmem:[#allocation45_spill] sm:$0xff] %v5515_v52  ;;  %v5543_v9 = vld [vmem:[%s4941_s21 + $0x180] sm:$0xff] }
  0x68   : > { %4043 = vmatprep.mubr.msk.f32.mxu1 %vm465_vm2, %v4967_v15  ;;  %4267 = vmatprep.mubr.msk.f32.mxu0 %vm465_vm2, %v5483_v49  ;;  %v5536_v34 = vsel %vm1051_vm3, %v1122_v62, %v1123_v57  ;;  %v5555_v60 = vsel %vm1051_vm3, %v1123_v57, %v1125_v35  ;;  %v1998_v62 = vrot.slane %v5543_v9, 2 }
  0x69   : > { %6333 = vst [vmem:[#allocation48_spill] sm:$0xff] %v5536_v34  ;;  %6334 = vst [vmem:[#allocation49_spill] sm:$0xff] %v5555_v60 }
  0x6b   : > { %4044 = vmatmul.mubr.msk.f32.gmra.mrb[4].mxu1 %vm465_vm2, %v4972_v18  ;;  %4268 = vmatmul.mubr.msk.f32.gmra.mrb[20].mxu0 %vm465_vm2, %v5498_v56 }
  0x6c   : > { %4046 = vmatprep.mubr.msk.f32.mxu1 %vm465_vm2, %v4984_v25  ;;  %4270 = vmatprep.mubr.msk.f32.mxu0 %vm465_vm2, %v5502_v14 }
  0x6f   : > { %4047 = vmatmul.mubr.msk.f32.gmra.mrb[6].mxu1 %vm465_vm2, %v4987_v26  ;;  %4271 = vmatmul.mubr.msk.f32.gmra.mrb[22].mxu0 %vm465_vm2, %v5515_v52  ;;  %v5564_v52 = vld [vmem:[%s4941_s21 + $0x190] sm:$0x3] }
  0x70   : > { %4049 = vmatprep.mubr.msk.f32.mxu1 %vm465_vm2, %v4998_v31  ;;  %4273 = vmatprep.mubr.msk.f32.mxu0 %vm465_vm2, %v5519_v27  ;;  %v1999_v27 = vrot.slane %v5546_v6, 2  ;;  %v2001_v57 = vrot.slane %v5564_v52, 2 }
  0x72   : > { %v5579_v35 = vsel %vm1051_vm3, %v1998_v62, %v1999_v27  ;;  %v5590_v2 = vsel %vm1051_vm3, %v1999_v27, %v2001_v57  ;;  %v5605_v27 = vld [vmem:[%s6211_s1 + $0x20] sm:$0xf] }
  0x73   : > { %4050 = vmatmul.mubr.msk.f32.gmra.mrb[8].mxu1 %vm465_vm2, %v5001_v32  ;;  %4274 = vmatmul.mubr.msk.f32.gmra.mrb[24].mxu0 %vm465_vm2, %v5532_v36  ;;  %6337 = vst [vmem:[#allocation52_spill] sm:$0xff] %v5579_v35  ;;  %6338 = vst [vmem:[#allocation53_spill] sm:$0xff] %v5590_v2  ;;  %v6344_v57 = vld [vmem:[#allocation33_spill] sm:$0xff] }
  0x74   : > { %4052 = vmatprep.mubr.msk.f32.mxu1 %vm465_vm2, %v5038_v42  ;;  %4276 = vmatprep.mubr.msk.f32.mxu0 %vm465_vm2, %v5536_v34 }
  0x77   : > { %4053 = vmatmul.mubr.msk.f32.gmra.mrb[10].mxu1 %vm465_vm2, %v5041_v43  ;;  %4277 = vmatmul.mubr.msk.f32.gmra.mrb[26].mxu0 %vm465_vm2, %v5555_v60 }
  0x78   : > { %4055 = vmatprep.mubr.msk.f32.mxu1 %vm465_vm2, %v5066_v50  ;;  %4279 = vmatprep.mubr.msk.f32.mxu0 %vm465_vm2, %v5559_v33 }
  0x7b   : > { %4056 = vmatmul.mubr.msk.f32.gmra.mrb[12].mxu1 %vm465_vm2, %v5069_v51  ;;  %4280 = vmatmul.mubr.msk.f32.gmra.mrb[28].mxu0 %vm465_vm2, %v5575_v48 }
  0x7c   : > { %4058 = vmatprep.mubr.msk.f32.mxu1 %vm465_vm2, %v5092_v58  ;;  %4282 = vmatprep.mubr.msk.f32.mxu0 %vm465_vm2, %v5579_v35  ;;  %v6349_v35 = vld [vmem:[#allocation9_spill] sm:$0xff] }
  0x7f   : > { %4059 = vmatmul.mubr.msk.f32.gmra.mrb[14].mxu1 %vm465_vm2, %v5095_v59  ;;  %4283 = vmatmul.mubr.msk.f32.gmra.mrb[30].mxu0 %vm465_vm2, %v5590_v2  ;;  %v6348_v2 = vld [vmem:[#allocation8_spill] sm:$0xff] }
  0x80   : > { %4061 = vmatprep.mubr.msk.f32.mxu1 %vm465_vm2, %v5118_v3  ;;  %4287 = vmatprep.mubr.msk.f32.mxu0 %vm465_vm2, %v4967_v15 }
  0x83   : > { %4062 = vmatmul.mubr.msk.f32.gmra.mrb[16].mxu1 %vm465_vm2, %v5121_v7  ;;  %4288 = vmatmul.mubr.msk.f32.vlgmr.msra.gmra.mrb[0].mxu0 %vm465_vm2, %v4972_v18 }
  0x84   : > { %4064 = vmatprep.mubr.msk.f32.mxu1 %vm465_vm2, %v5159_v28  ;;  %4336 = vmatpush3.msk.msra.mxu0 %vm530_vm0, %v5229_v30  ;;  %v1052_v30 = vrot.slane %v4944_v4, 2  ;;  %v1056_v4 = vsel %vm1051_vm3, %v1053_v38, %v1055_v37  ;;  %v6346_v37 = vld [vmem:[#allocation39_spill] sm:$0xff] }
  0x85   : > { %4290 = vmatprep.mubr.msk.f32.mxu0 %vm465_vm2, %v4984_v25  ;;  %4385 = vmatprep.subr.msk.mxu0 %vm530_vm0, %v5605_v27 }
  0x86   : > { %v1054_v62 = vsel %vm1051_vm3, %v1052_v30, %v1053_v38  ;;  %v6345_v30 = vld [vmem:[#allocation35_spill] sm:$0xff]  ;;  %v5729_v38 = vld [vmem:[%s4941_s21 + $0x198] sm:$0xff] }
  0x87   : > { %4065 = vmatmul.mubr.msk.f32.gmra.mrb[18].mxu1 %vm465_vm2, %v5162_v29  ;;  %4291 = vmatmul.mubr.msk.f32.gmra.mrb[2].mxu0 %vm465_vm2, %v4987_v26 }
  0x88   : > { %4067 = vmatprep.mubr.msk.f32.mxu1 %vm465_vm2, %v5187_v53  ;;  %4293 = vmatprep.mubr.msk.f32.mxu0 %vm465_vm2, %v4998_v31 }
  0x8b   : > { %4068 = vmatmul.mubr.msk.f32.gmra.mrb[20].mxu1 %vm465_vm2, %v5190_v55  ;;  %4294 = vmatmul.mubr.msk.f32.gmra.mrb[4].mxu0 %vm465_vm2, %v5001_v32 }
  0x8c   : > { %4070 = vmatprep.mubr.msk.f32.mxu1 %vm465_vm2, %v5219_v22  ;;  %4296 = vmatprep.mubr.msk.f32.mxu0 %vm465_vm2, %v5038_v42 }
  0x8f   : > { %4071 = vmatmul.mubr.msk.f32.gmra.mrb[22].mxu1 %vm465_vm2, %v5222_v24  ;;  %4297 = vmatmul.mubr.msk.f32.gmra.mrb[6].mxu0 %vm465_vm2, %v5041_v43 }
  0x90   : > { %4073 = vmatprep.mubr.msk.f32.mxu1 %vm465_vm2, %v5261_v8  ;;  %4299 = vmatprep.mubr.msk.f32.mxu0 %vm465_vm2, %v5066_v50 }
  0x93   : > { %4074 = vmatmul.mubr.msk.f32.gmra.mrb[24].mxu1 %vm465_vm2, %v5264_v10  ;;  %4300 = vmatmul.mubr.msk.f32.gmra.mrb[8].mxu0 %vm465_vm2, %v5069_v51 }
  0x94   : > { %4076 = vmatprep.mubr.msk.f32.mxu1 %vm465_vm2, %v5298_v46  ;;  %4302 = vmatprep.mubr.msk.f32.mxu0 %vm465_vm2, %v5092_v58 }
  0x97   : > { %4077 = vmatmul.mubr.msk.f32.gmra.mrb[26].mxu1 %vm465_vm2, %v5301_v12  ;;  %4303 = vmatmul.mubr.msk.f32.gmra.mrb[10].mxu0 %vm465_vm2, %v5095_v59 }
  0x98   : > { %4079 = vmatprep.mubr.msk.f32.mxu1 %vm465_vm2, %v5333_v20  ;;  %4305 = vmatprep.mubr.msk.f32.mxu0 %vm465_vm2, %v5118_v3 }
  0x9b   : > { %4080 = vmatmul.mubr.msk.f32.gmra.mrb[28].mxu1 %vm465_vm2, %v5336_v54  ;;  %4306 = vmatmul.mubr.msk.f32.gmra.mrb[12].mxu0 %vm465_vm2, %v5121_v7 }
  0x9c   : > { %4082 = vmatprep.mubr.msk.f32.mxu1 %vm465_vm2, %v5368_v40  ;;  %4308 = vmatprep.mubr.msk.f32.mxu0 %vm465_vm2, %v5159_v28 }
  0x9f   : > { %4083 = vmatmul.mubr.msk.f32.gmra.mrb[30].mxu1 %vm465_vm2, %v5371_v44  ;;  %4309 = vmatmul.mubr.msk.f32.gmra.mrb[14].mxu0 %vm465_vm2, %v5162_v29 }
  0xa0   : > { %4087 = vmatprep.mubr.msk.f32.mxu1 %vm465_vm2, %v1054_v62  ;;  %4311 = vmatprep.mubr.msk.f32.mxu0 %vm465_vm2, %v5187_v53  ;;  %v5740_v62 = vld [vmem:[%s4941_s21 + $0x1a0] sm:$0xff] }
  0xa3   : > { %4088 = vmatmul.mubr.msk.f32.vlgmr.msra.gmra.mrb[0].mxu1 %vm465_vm2, %v1056_v4  ;;  %4312 = vmatmul.mubr.msk.f32.gmra.mrb[16].mxu0 %vm465_vm2, %v5190_v55  ;;  %v6347_v4 = vld [vmem:[#allocation7_spill] sm:$0xff] }
  0xa4   : > { %4136 = vmatpush3.msk.msra.mxu1 %vm530_vm0, %v5468_v23  ;;  %4090 = vmatprep.mubr.msk.f32.mxu1 %vm465_vm2, %v5182_v47  ;;  %v6341_v47 = vld [vmem:[#allocation27_spill] sm:$0xff] }
  0xa5   : > { %4314 = vmatprep.mubr.msk.f32.mxu0 %vm465_vm2, %v5219_v22  ;;  %4435 = vmatprep.subr.msk.mxu1 %vm530_vm0, %v4920_v1  ;;  %v6343_v23 = vld [vmem:[#allocation31_spill] sm:$0xff] }
  0xa7   : > { %4091 = vmatmul.mubr.msk.f32.gmra.mrb[2].mxu1 %vm465_vm2, %v5203_v63  ;;  %4315 = vmatmul.mubr.msk.f32.gmra.mrb[18].mxu0 %vm465_vm2, %v5222_v24  ;;  %v6342_v63 = vld [vmem:[#allocation29_spill] sm:$0xff] }
  0xa8   : > { %4093 = vmatprep.mubr.msk.f32.mxu1 %vm465_vm2, %v5214_v21  ;;  %4317 = vmatprep.mubr.msk.f32.mxu0 %vm465_vm2, %v5261_v8 }
  0xab   : > { %4094 = vmatmul.mubr.msk.f32.gmra.mrb[4].mxu1 %vm465_vm2, %v6339_v5  ;;  %4318 = vmatmul.mubr.msk.f32.gmra.mrb[20].mxu0 %vm465_vm2, %v5264_v10 }
  0xac   : > { %4096 = vmatprep.mubr.msk.f32.mxu1 %vm465_vm2, %v6340_v11  ;;  %4320 = vmatprep.mubr.msk.f32.mxu0 %vm465_vm2, %v5298_v46 }
  0xaf   : > { %4097 = vmatmul.mubr.msk.f32.gmra.mrb[6].mxu1 %vm465_vm2, %v6341_v47  ;;  %4321 = vmatmul.mubr.msk.f32.gmra.mrb[22].mxu0 %vm465_vm2, %v5301_v12 }
  0xb0   : > { %4099 = vmatprep.mubr.msk.f32.mxu1 %vm465_vm2, %v6342_v63  ;;  %4323 = vmatprep.mubr.msk.f32.mxu0 %vm465_vm2, %v5333_v20 }
  0xb3   : > { %4100 = vmatmul.mubr.msk.f32.gmra.mrb[8].mxu1 %vm465_vm2, %v6343_v23  ;;  %4324 = vmatmul.mubr.msk.f32.gmra.mrb[24].mxu0 %vm465_vm2, %v5336_v54 }
  0xb4   : > { %4102 = vmatprep.mubr.msk.f32.mxu1 %vm465_vm2, %v6344_v57  ;;  %4326 = vmatprep.mubr.msk.f32.mxu0 %vm465_vm2, %v5368_v40 }
  0xb7   : > { %4103 = vmatmul.mubr.msk.f32.gmra.mrb[10].mxu1 %vm465_vm2, %v6345_v30  ;;  %4327 = vmatmul.mubr.msk.f32.gmra.mrb[26].mxu0 %vm465_vm2, %v5371_v44  ;;  %v6350_v44 = vld [vmem:[#allocation10_spill] sm:$0xff] }
  0xb8   : > { %4105 = vmatprep.mubr.msk.f32.mxu1 %vm465_vm2, %v5363_v19  ;;  %4329 = vmatprep.mubr.msk.f32.mxu0 %vm465_vm2, %v5543_v9 }
  0xbb   : > { %4106 = vmatmul.mubr.msk.f32.gmra.mrb[12].mxu1 %vm465_vm2, %v6346_v37  ;;  %4330 = vmatmul.mubr.msk.f32.gmra.mrb[28].mxu0 %vm465_vm2, %v5546_v6 }
  0xbc   : > { %4108 = vmatprep.mubr.msk.f32.mxu1 %vm465_vm2, %v5398_v39  ;;  %4332 = vmatprep.mubr.msk.f32.mxu0 %vm465_vm2, %v5729_v38 }
  0xbf   : > { %4109 = vmatmul.mubr.msk.f32.gmra.mrb[14].mxu1 %vm465_vm2, %v5415_v41  ;;  %4333 = vmatmul.mubr.msk.f32.gmra.mrb[30].mxu0 %vm465_vm2, %v5740_v62 }
  0xc0   : > { %4111 = vmatprep.mubr.msk.f32.mxu1 %vm465_vm2, %v5422_v13  ;;  %4337 = vmatprep.mubr.msk.f32.mxu0 %vm465_vm2, %v6347_v4  ;;  %v6351_v4 = vld [vmem:[#allocation11_spill] sm:$0xff] }
  0xc3   : > { %4112 = vmatmul.mubr.msk.f32.gmra.mrb[16].mxu1 %vm465_vm2, %v5438_v17  ;;  %4338 = vmatmul.mubr.msk.f32.vlgmr.msra.gmra.mrb[0].mxu0 %vm465_vm2, %v6348_v2  ;;  %v6352_v2 = vld [vmem:[#allocation12_spill] sm:$0xff] }
  0xc4   : > { %4114 = vmatprep.mubr.msk.f32.mxu1 %vm465_vm2, %v5442_v61  ;;  %4386 = vmatpush3.msk.msra.mxu0 %vm530_vm0, %v5605_v27  ;;  %v6355_v27 = vld [vmem:[#allocation15_spill] sm:$0xff] }
  0xc5   : > { %4340 = vmatprep.mubr.msk.f32.mxu0 %vm465_vm2, %v6349_v35  ;;  %v6353_v35 = vld [vmem:[#allocation13_spill] sm:$0xff] }
  0xc7   : > { %4115 = vmatmul.mubr.msk.f32.gmra.mrb[18].mxu1 %vm465_vm2, %v5455_v45  ;;  %4341 = vmatmul.mubr.msk.f32.gmra.mrb[2].mxu0 %vm465_vm2, %v6350_v44  ;;  %v6354_v44 = vld [vmem:[#allocation14_spill] sm:$0xff] }
  0xc8   : > { %4117 = vmatprep.mubr.msk.f32.mxu1 %vm465_vm2, %v5459_v0  ;;  %4343 = vmatprep.mubr.msk.f32.mxu0 %vm465_vm2, %v6351_v4  ;;  %v6356_v4 = vld [vmem:[#allocation45_spill] sm:$0xff] }
  0xcb   : > { %4118 = vmatmul.mubr.msk.f32.gmra.mrb[20].mxu1 %vm465_vm2, %v5479_v16  ;;  %4344 = vmatmul.mubr.msk.f32.gmra.mrb[4].mxu0 %vm465_vm2, %v6352_v2  ;;  %v6357_v2 = vld [vmem:[#allocation16_spill] sm:$0xff] }
  0xcc   : > { %4120 = vmatprep.mubr.msk.f32.mxu1 %vm465_vm2, %v5483_v49  ;;  %4346 = vmatprep.mubr.msk.f32.mxu0 %vm465_vm2, %v6353_v35  ;;  %v6358_v49 = vld [vmem:[#allocation46_spill] sm:$0xff]  ;;  %v6359_v35 = vld [vmem:[#allocation17_spill] sm:$0xff] }
  0xcf   : > { %4121 = vmatmul.mubr.msk.f32.gmra.mrb[22].mxu1 %vm465_vm2, %v5498_v56  ;;  %4347 = vmatmul.mubr.msk.f32.gmra.mrb[6].mxu0 %vm465_vm2, %v6354_v44  ;;  %v6360_v44 = vld [vmem:[#allocation18_spill] sm:$0xff] }
  0xd0   : > { %4123 = vmatprep.mubr.msk.f32.mxu1 %vm465_vm2, %v5502_v14  ;;  %4349 = vmatprep.mubr.msk.f32.mxu0 %vm465_vm2, %v6355_v27  ;;  %v6361_v27 = vld [vmem:[#allocation19_spill] sm:$0xff] }
  0xd3   : > { %4124 = vmatmul.mubr.msk.f32.gmra.mrb[24].mxu1 %vm465_vm2, %v6356_v4  ;;  %4350 = vmatmul.mubr.msk.f32.gmra.mrb[8].mxu0 %vm465_vm2, %v6357_v2  ;;  %v6362_v2 = vld [vmem:[#allocation20_spill] sm:$0xff] }
  0xd4   : > { %4126 = vmatprep.mubr.msk.f32.mxu1 %vm465_vm2, %v6358_v49  ;;  %4352 = vmatprep.mubr.msk.f32.mxu0 %vm465_vm2, %v6359_v35  ;;  %v6363_v35 = vld [vmem:[#allocation21_spill] sm:$0xff] }
  0xd7   : > { %4127 = vmatmul.mubr.msk.f32.gmra.mrb[26].mxu1 %vm465_vm2, %v5532_v36  ;;  %4353 = vmatmul.mubr.msk.f32.gmra.mrb[10].mxu0 %vm465_vm2, %v6360_v44  ;;  %v6364_v44 = vld [vmem:[#allocation22_spill] sm:$0xff] }
  0xd8   : > { %4129 = vmatprep.mubr.msk.f32.mxu1 %vm465_vm2, %v5536_v34  ;;  %4355 = vmatprep.mubr.msk.f32.mxu0 %vm465_vm2, %v6361_v27  ;;  %v6365_v34 = vld [vmem:[#allocation5_spill] sm:$0xff]  ;;  %v6366_v27 = vld [vmem:[#allocation24_spill] sm:$0xff]  ;;  %v5867_v36 = vld [vmem:[%s4941_s21 + $0x1a8] sm:$0x3]  ;;  %s3373_s21 = sshll.u32 %s256_s10, 8 }
  0xd9   : > { %s6055_s22 = scalar_lea.vmem [#allocation2], %s3373_s21 }
  0xda   : > { %s3240_s26 = sshll.u32 %s6055_s22, 4  ;;  %s6158_s26 = int_to_ptr.vmem [resolvable:$true] %s3240_s26 }
  0xdb   : > { %4130 = vmatmul.mubr.msk.f32.gmra.mrb[28].mxu1 %vm465_vm2, %v5555_v60  ;;  %4356 = vmatmul.mubr.msk.f32.gmra.mrb[12].mxu0 %vm465_vm2, %v6362_v2  ;;  %v6367_v60 = vld [vmem:[#allocation6_spill] sm:$0xff]  ;;  %s4751_s6 = scalar_lea.vmem %s6158_s26, 4096  ;;  %p4758_p1 = scmp.lt.s32.totalorder %s6158_s26, %s4756_s8 }
  0xdc   : > { %4132 = vmatprep.mubr.msk.f32.mxu1 %vm465_vm2, %v5559_v33  ;;  %4358 = vmatprep.mubr.msk.f32.mxu0 %vm465_vm2, %v6363_v35  ;;  %v6368_v2 = vld [vmem:[#allocation26_spill] sm:$0xff]  ;;  %v6376_v33 = vld [vmem:[#allocation41_spill] sm:$0xff]  ;;  %p4752_p12 = scmp.ne.s32.totalorder %s6158_s26, %s4751_s6  ;;  %p4759_p2 = scmp.lt.s32.totalorder %s4757_s9, %s4751_s6 }
  0xde   : > { %p4753_p13 = pnand %p4752_p12, %p4899_p4  ;;  %p4760_p3 = por %p4759_p2, %p4758_p1 }
  0xdf   : > { %4133 = vmatmul.mubr.msk.f32.gmra.mrb[30].mxu1 %vm465_vm2, %v5575_v48  ;;  %4359 = vmatmul.mubr.msk.f32.gmra.mrb[14].mxu0 %vm465_vm2, %v6364_v44  ;;  %v6369_v48 = vld [vmem:[#allocation28_spill] sm:$0xff] }
  0xe0   : > { %4137 = vmatprep.mubr.msk.f32.mxu1 %vm465_vm2, %v6365_v34  ;;  %4361 = vmatprep.mubr.msk.f32.mxu0 %vm465_vm2, %v6366_v27  ;;  %v6370_v34 = vld [vmem:[#allocation30_spill] sm:$0xff]  ;;  %p4754_p0 = pneg %p4753_p13 }
  0xe2   : > { %p4761_p5 = pnand %p4760_p3, %p4754_p0 }
  0xe3   : > { %4138 = vmatmul.mubr.msk.f32.vlgmr.msra.gmra.mrb[0].mxu1 %vm465_vm2, %v6367_v60  ;;  %4362 = vmatmul.mubr.msk.f32.gmra.mrb[16].mxu0 %vm465_vm2, %v6368_v2  ;;  %v6371_v60 = vld [vmem:[#allocation32_spill] sm:$0xff] }
  0xe4   : > { %4436 = vmatpush3.msk.msra.mxu1 %vm530_vm0, %v4920_v1  ;;  %4140 = vmatprep.mubr.msk.f32.mxu1 %vm465_vm2, %v4967_v15  ;;  %v6372_v1 = vld [vmem:[#allocation34_spill] sm:$0xff]  ;;  %v6373_v15 = vld [vmem:[#allocation36_spill] sm:$0xff] }
  0xe5   : > { %4364 = vmatprep.mubr.msk.f32.mxu0 %vm465_vm2, %v6369_v48 }
  0xe7   : > { %4141 = vmatmul.mubr.msk.f32.gmra.mrb[2].mxu1 %vm465_vm2, %v4972_v18  ;;  %4365 = vmatmul.mubr.msk.f32.gmra.mrb[18].mxu0 %vm465_vm2, %v6370_v34  ;;  %v6374_v18 = vld [vmem:[#allocation38_spill] sm:$0xff] }
  0xe8   : > { %4143 = vmatprep.mubr.msk.f32.mxu1 %vm465_vm2, %v4984_v25  ;;  %4367 = vmatprep.mubr.msk.f32.mxu0 %vm465_vm2, %v6371_v60  ;;  %v6375_v25 = vld [vmem:[#allocation40_spill] sm:$0xff] }
  0xeb   : > { %4144 = vmatmul.mubr.msk.f32.gmra.mrb[4].mxu1 %vm465_vm2, %v4987_v26  ;;  %4368 = vmatmul.mubr.msk.f32.gmra.mrb[20].mxu0 %vm465_vm2, %v6372_v1  ;;  %v1727_v26 = vrot.slane %v5543_v9, 1 }
  0xec   : > { %4146 = vmatprep.mubr.msk.f32.mxu1 %vm465_vm2, %v4998_v31  ;;  %4370 = vmatprep.mubr.msk.f32.mxu0 %vm465_vm2, %v6373_v15  ;;  %v1728_v31 = vrot.slane %v5546_v6, 1 }
  0xee   : > { %v5864_v15 = vsel %vm382_vm1, %v1727_v26, %v1728_v31 }
  0xef   : > { %4147 = vmatmul.mubr.msk.f32.gmra.mrb[6].mxu1 %vm465_vm2, %v5001_v32  ;;  %4371 = vmatmul.mubr.msk.f32.gmra.mrb[22].mxu0 %vm465_vm2, %v6374_v18  ;;  %v6377_v32 = vld [vmem:[#allocation42_spill] sm:$0xff]  ;;  %v2539_v18 = vrot.slane %v5740_v62, 1 }
  0xf0   : > { %4149 = vmatprep.mubr.msk.f32.mxu1 %vm465_vm2, %v5038_v42  ;;  %4373 = vmatprep.mubr.msk.f32.mxu0 %vm465_vm2, %v6375_v25  ;;  %v1730_v42 = vrot.slane %v5564_v52, 1  ;;  %v2538_v25 = vrot.slane %v5729_v38, 1  ;;  %v2541_v52 = vrot.slane %v5867_v36, 1 }
  0xf2   : > { %v2540_v26 = vsel %vm382_vm1, %v2538_v25, %v2539_v18 }
  0xf3   : > { %4150 = vmatmul.mubr.msk.f32.gmra.mrb[8].mxu1 %vm465_vm2, %v5041_v43  ;;  %4374 = vmatmul.mubr.msk.f32.gmra.mrb[24].mxu0 %vm465_vm2, %v6376_v33  ;;  %v6378_v43 = vld [vmem:[#allocation43_spill] sm:$0xff] }
  0xf4   : > { %4152 = vmatprep.mubr.msk.f32.mxu1 %vm465_vm2, %v5066_v50  ;;  %4376 = vmatprep.mubr.msk.f32.mxu0 %vm465_vm2, %v6377_v32  ;;  %v5878_v50 = vsel %vm382_vm1, %v1728_v31, %v1730_v42 }
  0xf7   : > { %4153 = vmatmul.mubr.msk.f32.gmra.mrb[10].mxu1 %vm465_vm2, %v5069_v51  ;;  %4377 = vmatmul.mubr.msk.f32.gmra.mrb[26].mxu0 %vm465_vm2, %v6378_v43  ;;  %v2542_v51 = vsel %vm382_vm1, %v2539_v18, %v2541_v52 }
  0xf8   : > { %4155 = vmatprep.mubr.msk.f32.mxu1 %vm465_vm2, %v5092_v58  ;;  %4379 = vmatprep.mubr.msk.f32.mxu0 %vm465_vm2, %v5864_v15  ;;  %v6382_v58 = vld [vmem:[#allocation36_spill] sm:$0xff] }
  0xfb   : > { %4156 = vmatmul.mubr.msk.f32.gmra.mrb[12].mxu1 %vm465_vm2, %v5095_v59  ;;  %4380 = vmatmul.mubr.msk.f32.gmra.mrb[28].mxu0 %vm465_vm2, %v5878_v50  ;;  %v6383_v59 = vld [vmem:[#allocation48_spill] sm:$0xff] }
  0xfc   : > { %4158 = vmatprep.mubr.msk.f32.mxu1 %vm465_vm2, %v5118_v3  ;;  %4382 = vmatprep.mubr.msk.f32.mxu0 %vm465_vm2, %v2540_v26  ;;  %v6384_v3 = vld [vmem:[#allocation38_spill] sm:$0xff] }
  0xff   : > { %4159 = vmatmul.mubr.msk.f32.gmra.mrb[14].mxu1 %vm465_vm2, %v5121_v7  ;;  %4383 = vmatmul.mubr.msk.f32.gmra.mrb[30].mxu0 %vm465_vm2, %v2542_v51  ;;  %v6385_v7 = vld [vmem:[#allocation49_spill] sm:$0xff] }
 0x100   : > { %4161 = vmatprep.mubr.msk.f32.mxu1 %vm465_vm2, %v5159_v28  ;;  %4387 = vmatprep.mubr.msk.f32.mxu0 %vm465_vm2, %v5214_v21  ;;  %v2809_v28 = vrot.slane %v5729_v38, 2  ;;  %v2812_v21 = vrot.slane %v5867_v36, 2 }
 0x103   : > { %4162 = vmatmul.mubr.msk.f32.gmra.mrb[16].mxu1 %vm465_vm2, %v5162_v29  ;;  %4388 = vmatmul.mubr.msk.f32.vlgmr.msra.gmra.mrb[0].mxu0 %vm465_vm2, %v6339_v5  ;;  %v2810_v29 = vrot.slane %v5740_v62, 2 }
 0x104   : > { %4164 = vmatprep.mubr.msk.f32.mxu1 %vm465_vm2, %v5187_v53  ;;  %4390 = vmatprep.mubr.msk.f32.mxu0 %vm465_vm2, %v6340_v11  ;;  %v6388_v53 = vld [vmem:[#allocation51_spill] sm:$0xff] }
 0x107   : > { %4165 = vmatmul.mubr.msk.f32.gmra.mrb[18].mxu1 %vm465_vm2, %v5190_v55  ;;  %4391 = vmatmul.mubr.msk.f32.gmra.mrb[2].mxu0 %vm465_vm2, %v6341_v47  ;;  %v6389_v55 = vld [vmem:[#allocation52_spill] sm:$0xff]  ;;  %v6045_v47 = vld [vmem:[%s6213_s3] ss:$0 sm:$0xff] }
 0x108   : > { %4167 = vmatprep.mubr.msk.f32.mxu1 %vm465_vm2, %v5219_v22  ;;  %4393 = vmatprep.mubr.msk.f32.mxu0 %vm465_vm2, %v6342_v63  ;;  %v6387_v22 = vld [vmem:[#allocation50_spill] sm:$0xff] }
 0x10b   : > { %4168 = vmatmul.mubr.msk.f32.gmra.mrb[20].mxu1 %vm465_vm2, %v5222_v24  ;;  %4394 = vmatmul.mubr.msk.f32.gmra.mrb[4].mxu0 %vm465_vm2, %v6343_v23  ;;  %v2811_v24 = vsel %vm1051_vm3, %v2809_v28, %v2810_v29 }
 0x10c   : > { %4170 = vmatprep.mubr.msk.f32.mxu1 %vm465_vm2, %v5261_v8  ;;  %4396 = vmatprep.mubr.msk.f32.mxu0 %vm465_vm2, %v6344_v57  ;;  %v6386_v8 = vld [vmem:[#allocation40_spill] sm:$0xff] }
 0x10f   : > { %4171 = vmatmul.mubr.msk.f32.gmra.mrb[22].mxu1 %vm465_vm2, %v5264_v10  ;;  %4397 = vmatmul.mubr.msk.f32.gmra.mrb[6].mxu0 %vm465_vm2, %v6345_v30  ;;  %v6390_v10 = vld [vmem:[#allocation53_spill] sm:$0xff] }
 0x110   : > { %4173 = vmatprep.mubr.msk.f32.mxu1 %vm465_vm2, %v5298_v46  ;;  %4399 = vmatprep.mubr.msk.f32.mxu0 %vm465_vm2, %v5363_v19  ;;  %v6379_v46 = vld [vmem:[#allocation37_spill] sm:$0xff] }
 0x113   : > { %4174 = vmatmul.mubr.msk.f32.gmra.mrb[24].mxu1 %vm465_vm2, %v5301_v12  ;;  %4400 = vmatmul.mubr.msk.f32.gmra.mrb[8].mxu0 %vm465_vm2, %v6346_v37  ;;  %v2813_v12 = vsel %vm1051_vm3, %v2810_v29, %v2812_v21 }
 0x114   : > { %4176 = vmatprep.mubr.msk.f32.mxu1 %vm465_vm2, %v5333_v20  ;;  %4402 = vmatprep.mubr.msk.f32.mxu0 %vm465_vm2, %v5398_v39 }
 0x117   : > { %4177 = vmatmul.mubr.msk.f32.gmra.mrb[26].mxu1 %vm465_vm2, %v5336_v54  ;;  %4403 = vmatmul.mubr.msk.f32.gmra.mrb[10].mxu0 %vm465_vm2, %v5415_v41 }
 0x118   : > { %4179 = vmatprep.mubr.msk.f32.mxu1 %vm465_vm2, %v5368_v40  ;;  %4405 = vmatprep.mubr.msk.f32.mxu0 %vm465_vm2, %v5422_v13 }
 0x11b   : > { %4180 = vmatmul.mubr.msk.f32.gmra.mrb[28].mxu1 %vm465_vm2, %v6379_v46  ;;  %4406 = vmatmul.mubr.msk.f32.gmra.mrb[12].mxu0 %vm465_vm2, %v5438_v17 }
 0x11c   : > { %4182 = vmatprep.mubr.msk.f32.mxu1 %vm465_vm2, %v5543_v9  ;;  %4408 = vmatprep.mubr.msk.f32.mxu0 %vm465_vm2, %v5442_v61  ;;  %v6380_v9 = vld [vmem:[#allocation44_spill] sm:$0xff] }
 0x11f   : > { %4183 = vmatmul.mubr.msk.f32.gmra.mrb[30].mxu1 %vm465_vm2, %v5546_v6  ;;  %4409 = vmatmul.mubr.msk.f32.gmra.mrb[14].mxu0 %vm465_vm2, %v5455_v45  ;;  %v6381_v6 = vld [vmem:[#allocation47_spill] sm:$0xff] }
 0x120   : > { %4211 = vmatprep.mubr.msk.f32.mxu1 %vm465_vm2, %v6363_v35  ;;  %4411 = vmatprep.mubr.msk.f32.mxu0 %vm465_vm2, %v5459_v0 }
 0x123   : > { %4212 = vmatmul.mubr.msk.f32.vlgmr.msra.gmra.mrb[16].mxu1 %vm465_vm2, %v6364_v44  ;;  %4412 = vmatmul.mubr.msk.f32.gmra.mrb[16].mxu0 %vm465_vm2, %v5479_v16 }
 0x124   : > { %4214 = vmatprep.mubr.msk.f32.mxu1 %vm465_vm2, %v6366_v27  ;;  %4414 = vmatprep.mubr.msk.f32.mxu0 %vm465_vm2, %v6380_v9 }
 0x127   : > { %4215 = vmatmul.mubr.msk.f32.gmra.mrb[18].mxu1 %vm465_vm2, %v6368_v2  ;;  %4415 = vmatmul.mubr.msk.f32.gmra.mrb[18].mxu0 %vm465_vm2, %v5498_v56 }
 0x128   : > { %4217 = vmatprep.mubr.msk.f32.mxu1 %vm465_vm2, %v6369_v48  ;;  %4417 = vmatprep.mubr.msk.f32.mxu0 %vm465_vm2, %v5502_v14  ;;  %v6040_v48 = vld [vmem:[%s6212_s2] ss:$0 sm:$0xff] }
 0x12b   : > { %4218 = vmatmul.mubr.msk.f32.gmra.mrb[20].mxu1 %vm465_vm2, %v6370_v34  ;;  %4418 = vmatmul.mubr.msk.f32.gmra.mrb[20].mxu0 %vm465_vm2, %v6356_v4 }
 0x12c   : > { %4220 = vmatprep.mubr.msk.f32.mxu1 %vm465_vm2, %v6371_v60  ;;  %4420 = vmatprep.mubr.msk.f32.mxu0 %vm465_vm2, %v6358_v49 }
 0x12f   : > { %4221 = vmatmul.mubr.msk.f32.gmra.mrb[22].mxu1 %vm465_vm2, %v6372_v1  ;;  %4421 = vmatmul.mubr.msk.f32.gmra.mrb[22].mxu0 %vm465_vm2, %v6381_v6 }
 0x130   : > { %4223 = vmatprep.mubr.msk.f32.mxu1 %vm465_vm2, %v6382_v58  ;;  %4423 = vmatprep.mubr.msk.f32.mxu0 %vm465_vm2, %v6383_v59 }
 0x133   : > { %4224 = vmatmul.mubr.msk.f32.gmra.mrb[24].mxu1 %vm465_vm2, %v6384_v3  ;;  %4424 = vmatmul.mubr.msk.f32.gmra.mrb[24].mxu0 %vm465_vm2, %v6385_v7 }
 0x134   : > { %4226 = vmatprep.mubr.msk.f32.mxu1 %vm465_vm2, %v6386_v8  ;;  %4426 = vmatprep.mubr.msk.f32.mxu0 %vm465_vm2, %v6387_v22 }
 0x137   : > { %4227 = vmatmul.mubr.msk.f32.gmra.mrb[26].mxu1 %vm465_vm2, %v6376_v33  ;;  %4427 = vmatmul.mubr.msk.f32.gmra.mrb[26].mxu0 %vm465_vm2, %v6388_v53 }
 0x138   : > { %4229 = vmatprep.mubr.msk.f32.mxu1 %vm465_vm2, %v6377_v32  ;;  %4429 = vmatprep.mubr.msk.f32.mxu0 %vm465_vm2, %v6389_v55 }
 0x13b   : > { %4230 = vmatmul.mubr.msk.f32.gmra.mrb[28].mxu1 %vm465_vm2, %v6378_v43  ;;  %4430 = vmatmul.mubr.msk.f32.gmra.mrb[28].mxu0 %vm465_vm2, %v6390_v10 }
 0x13c   : > { %4232 = vmatprep.mubr.msk.f32.mxu1 %vm465_vm2, %v5864_v15  ;;  %4432 = vmatprep.mubr.msk.f32.mxu0 %vm465_vm2, %v2811_v24 }
 0x13f   : > { %4233 = vmatmul.mubr.msk.f32.gmra.mrb[30].mxu1 %vm465_vm2, %v5878_v50  ;;  %4433 = vmatmul.mubr.msk.f32.gmra.mrb[30].mxu0 %vm465_vm2, %v2813_v12 }
 0x1b6   : > { %v4139_v40 = vpop.f32.mrb[0].mxu1 }
 0x1b7   : > { %v1535_v20 = vpop.f32.mrb[1].mxu1 }
 0x1ba   : > { %v4142_v54 = vpop.f32.mrb[2].mxu1 }
 0x1bb   : > { %v1545_v19 = vpop.f32.mrb[3].mxu1 }
 0x1be   : > { %v4145_v13 = vpop.f32.mrb[4].mxu1 }
 0x1bf   : > { %v1555_v39 = vpop.f32.mrb[5].mxu1 }
 0x1c2   : > { %v4148_v41 = vpop.f32.mrb[6].mxu1 }
 0x1c3   : > { %v1565_v17 = vpop.f32.mrb[7].mxu1 }
 0x1c6   : > { %v4151_v61 = vpop.f32.mrb[8].mxu1 }
 0x1c7   : > { %v1575_v45 = vpop.f32.mrb[9].mxu1 }
 0x1ca   : > { %v6024_v0 = vpop.f32.mrb[10].mxu1 }
 0x1cb   : > { %v6026_v16 = vpop.f32.mrb[11].mxu1 }
 0x1ce   : > { %v6028_v49 = vpop.f32.mrb[12].mxu1 }
 0x1cf   : > { %v6030_v56 = vpop.f32.mrb[13].mxu1 }
 0x1d2   : > { %v6032_v14 = vpop.f32.mrb[14].mxu1 }
 0x1d3   : > { %v6034_v36 = vpop.f32.mrb[15].mxu1 }
 0x1d6   : > { %v4389_v33 = vpop.f32.mrb[0].mxu0 }
 0x1d7   : > { %v4437_v5 = vadd.f32 %v4389_v33, %v4139_v40  ;;  %v2889_v11 = vpop.f32.mrb[1].mxu0 }
 0x1d8   : > { %v4438_v63 = vadd.f32 %v2889_v11, %v1535_v20 }
 0x1d9   : > { %v3088_v23 = vmul.f32 %v4437_v5, %v6040_v48 }
 0x1da   : > { %v3087_v57 = vmul.f32 %v4438_v63, %v6040_v48  ;;  %v4392_v30 = vpop.f32.mrb[2].mxu0 }
 0x1db   : > { %v3127_v38 = vadd.f32 %v6045_v47, %v3088_v23  ;;  %v4439_v37 = vadd.f32 %v4392_v30, %v4142_v54  ;;  %v2899_v62 = vpop.f32.mrb[3].mxu0 }
 0x1dc   : > { %v3126_v4 = vadd.f32 %v6045_v47, %v3087_v57  ;;  %v4440_v35 = vadd.f32 %v2899_v62, %v1545_v19 }
 0x1dd   : > { %v3159_v44 = vmax.f32 %v3127_v38, 0.0  ;;  %v3090_v27 = vmul.f32 %v4439_v37, %v6040_v48 }
 0x1de   : > { %v3158_v2 = vmax.f32 %v3126_v4, 0.0  ;;  %v3089_v34 = vmul.f32 %v4440_v35, %v6040_v48  ;;  %v4395_v60 = vpop.f32.mrb[4].mxu0 }
 0x1df   : > { %3191 = vst [vmem:[%s6055_s22 + $0x8] sm:$0xff] %v3159_v44  ;;  %v3129_v1 = vadd.f32 %v6045_v47, %v3090_v27  ;;  %v4441_v15 = vadd.f32 %v4395_v60, %v4145_v13  ;;  %v2909_v18 = vpop.f32.mrb[5].mxu0 }
 0x1e0   : > { %3190 = vst [vmem:[%s6055_s22] sm:$0xff] %v3158_v2  ;;  %v3128_v25 = vadd.f32 %v6045_v47, %v3089_v34  ;;  %v4442_v31 = vadd.f32 %v2909_v18, %v1555_v39 }
 0x1e1   : > { %v3161_v32 = vmax.f32 %v3129_v1, 0.0  ;;  %v3092_v42 = vmul.f32 %v4441_v15, %v6040_v48 }
 0x1e2   : > { %v3160_v43 = vmax.f32 %v3128_v25, 0.0  ;;  %v3091_v50 = vmul.f32 %v4442_v31, %v6040_v48  ;;  %v4398_v52 = vpop.f32.mrb[6].mxu0 }
 0x1e3   : > { %3193 = vst [vmem:[%s6055_s22 + $0x18] sm:$0xff] %v3161_v32  ;;  %v3131_v26 = vadd.f32 %v6045_v47, %v3092_v42  ;;  %v4443_v51 = vadd.f32 %v4398_v52, %v4148_v41  ;;  %v2919_v46 = vpop.f32.mrb[7].mxu0 }
 0x1e4   : > { %3192 = vst [vmem:[%s6055_s22 + $0x10] sm:$0xff] %v3160_v43  ;;  %v3130_v9 = vadd.f32 %v6045_v47, %v3091_v50  ;;  %v4444_v6 = vadd.f32 %v2919_v46, %v1565_v17 }
 0x1e5   : > { %v3163_v58 = vmax.f32 %v3131_v26, 0.0  ;;  %v3094_v59 = vmul.f32 %v4443_v51, %v6040_v48 }
 0x1e6   : > { %v3162_v3 = vmax.f32 %v3130_v9, 0.0  ;;  %v3093_v7 = vmul.f32 %v4444_v6, %v6040_v48  ;;  %v4401_v8 = vpop.f32.mrb[8].mxu0 }
 0x1e7   : > { %3195 = vst [vmem:[%s6055_s22 + $0x28] sm:$0xff] %v3163_v58  ;;  %v3133_v22 = vadd.f32 %v6045_v47, %v3094_v59  ;;  %v4445_v28 = vadd.f32 %v4401_v8, %v4151_v61  ;;  %v2929_v29 = vpop.f32.mrb[9].mxu0 }
 0x1e8   : > { %3194 = vst [vmem:[%s6055_s22 + $0x20] sm:$0xff] %v3162_v3  ;;  %v3132_v53 = vadd.f32 %v6045_v47, %v3093_v7  ;;  %v4446_v55 = vadd.f32 %v2929_v29, %v1575_v45 }
 0x1e9   : > { %v3165_v21 = vmax.f32 %v3133_v22, 0.0  ;;  %v3096_v24 = vmul.f32 %v4445_v28, %v6040_v48 }
 0x1ea   : > { %v3164_v10 = vmax.f32 %v3132_v53, 0.0  ;;  %v3095_v12 = vmul.f32 %v4446_v55, %v6040_v48  ;;  %v4404_v40 = vpop.f32.mrb[10].mxu0 }
 0x1eb   : > { %3197 = vst [vmem:[%s6055_s22 + $0x38] sm:$0xff] %v3165_v21  ;;  %v3135_v20 = vadd.f32 %v6045_v47, %v3096_v24  ;;  %v4447_v54 = vadd.f32 %v4404_v40, %v6024_v0  ;;  %v2939_v19 = vpop.f32.mrb[11].mxu0 }
 0x1ec   : > { %3196 = vst [vmem:[%s6055_s22 + $0x30] sm:$0xff] %v3164_v10  ;;  %v3134_v13 = vadd.f32 %v6045_v47, %v3095_v12  ;;  %v4448_v39 = vadd.f32 %v2939_v19, %v6026_v16 }
 0x1ed   : > { %v3167_v41 = vmax.f32 %v3135_v20, 0.0  ;;  %v3098_v17 = vmul.f32 %v4447_v54, %v6040_v48 }
 0x1ee   : > { %v3166_v61 = vmax.f32 %v3134_v13, 0.0  ;;  %v3097_v45 = vmul.f32 %v4448_v39, %v6040_v48  ;;  %v4407_v33 = vpop.f32.mrb[12].mxu0 }
 0x1ef   : > { %3199 = vst [vmem:[%s6055_s22 + $0x48] sm:$0xff] %v3167_v41  ;;  %v3137_v5 = vadd.f32 %v6045_v47, %v3098_v17  ;;  %v4449_v0 = vadd.f32 %v4407_v33, %v6028_v49  ;;  %v2949_v11 = vpop.f32.mrb[13].mxu0 }
 0x1f0   : > { %3198 = vst [vmem:[%s6055_s22 + $0x40] sm:$0xff] %v3166_v61  ;;  %v3136_v63 = vadd.f32 %v6045_v47, %v3097_v45  ;;  %v4450_v16 = vadd.f32 %v2949_v11, %v6030_v56 }
 0x1f1   : > { %v3169_v23 = vmax.f32 %v3137_v5, 0.0  ;;  %v3100_v57 = vmul.f32 %v4449_v0, %v6040_v48 }
 0x1f2   : > { %v3168_v30 = vmax.f32 %v3136_v63, 0.0  ;;  %v3099_v38 = vmul.f32 %v4450_v16, %v6040_v48  ;;  %v4410_v37 = vpop.f32.mrb[14].mxu0 }
 0x1f3   : > { %3201 = vst [vmem:[%s6055_s22 + $0x58] sm:$0xff] %v3169_v23  ;;  %v3139_v62 = vadd.f32 %v6045_v47, %v3100_v57  ;;  %v4451_v4 = vadd.f32 %v4410_v37, %v6032_v14  ;;  %v2959_v49 = vpop.f32.mrb[15].mxu0 }
 0x1f4   : > { %3200 = vst [vmem:[%s6055_s22 + $0x50] sm:$0xff] %v3168_v30  ;;  %v3138_v35 = vadd.f32 %v6045_v47, %v3099_v38  ;;  %v4452_v56 = vadd.f32 %v2959_v49, %v6034_v36 }
 0x1f5   : > { %v3171_v44 = vmax.f32 %v3139_v62, 0.0  ;;  %v3102_v27 = vmul.f32 %v4451_v4, %v6040_v48 }
 0x1f6   : > { %v4213_v2 = vpop.f32.mrb[16].mxu1  ;;  %v3170_v34 = vmax.f32 %v3138_v35, 0.0  ;;  %v3101_v60 = vmul.f32 %v4452_v56, %v6040_v48  ;;  %v4413_v1 = vpop.f32.mrb[16].mxu0 }
 0x1f7   : > { %v1887_v15 = vpop.f32.mrb[17].mxu1  ;;  %3203 = vst [vmem:[%s6055_s22 + $0x68] sm:$0xff] %v3171_v44  ;;  %v3141_v14 = vadd.f32 %v6045_v47, %v3102_v27  ;;  %v4453_v18 = vadd.f32 %v4413_v1, %v4213_v2  ;;  %v2969_v25 = vpop.f32.mrb[17].mxu0 }
 0x1f8   : > { %3202 = vst [vmem:[%s6055_s22 + $0x60] sm:$0xff] %v3170_v34  ;;  %v3140_v31 = vadd.f32 %v6045_v47, %v3101_v60  ;;  %v4454_v36 = vadd.f32 %v2969_v25, %v1887_v15 }
 0x1f9   : > { %v3173_v32 = vmax.f32 %v3141_v14, 0.0  ;;  %v3104_v42 = vmul.f32 %v4453_v18, %v6040_v48 }
 0x1fa   : > { %v4216_v43 = vpop.f32.mrb[18].mxu1  ;;  %v3172_v50 = vmax.f32 %v3140_v31, 0.0  ;;  %v3103_v52 = vmul.f32 %v4454_v36, %v6040_v48  ;;  %v4416_v26 = vpop.f32.mrb[18].mxu0 }
 0x1fb   : > { %v1897_v51 = vpop.f32.mrb[19].mxu1  ;;  %3205 = vst [vmem:[%s6055_s22 + $0x78] sm:$0xff] %v3173_v32  ;;  %v3143_v46 = vadd.f32 %v6045_v47, %v3104_v42  ;;  %v4455_v9 = vadd.f32 %v4416_v26, %v4216_v43  ;;  %v2979_v6 = vpop.f32.mrb[19].mxu0 }
 0x1fc   : > { %3204 = vst [vmem:[%s6055_s22 + $0x70] sm:$0xff] %v3172_v50  ;;  %v3142_v58 = vadd.f32 %v6045_v47, %v3103_v52  ;;  %v4456_v59 = vadd.f32 %v2979_v6, %v1897_v51 }
 0x1fd   : > { %v3175_v3 = vmax.f32 %v3143_v46, 0.0  ;;  %v3106_v7 = vmul.f32 %v4455_v9, %v6040_v48 }
 0x1fe   : > { %v4219_v8 = vpop.f32.mrb[20].mxu1  ;;  %v3174_v22 = vmax.f32 %v3142_v58, 0.0  ;;  %v3105_v28 = vmul.f32 %v4456_v59, %v6040_v48  ;;  %v4419_v29 = vpop.f32.mrb[20].mxu0 }
 0x1ff   : > { %v1907_v53 = vpop.f32.mrb[21].mxu1  ;;  %3207 = vst [vmem:[%s6055_s22 + $0x88] sm:$0xff] %v3175_v3  ;;  %v3145_v55 = vadd.f32 %v6045_v47, %v3106_v7  ;;  %v4457_v21 = vadd.f32 %v4419_v29, %v4219_v8  ;;  %v2989_v24 = vpop.f32.mrb[21].mxu0 }
 0x200   : > { %3206 = vst [vmem:[%s6055_s22 + $0x80] sm:$0xff] %v3174_v22  ;;  %v3144_v10 = vadd.f32 %v6045_v47, %v3105_v28  ;;  %v4458_v12 = vadd.f32 %v2989_v24, %v1907_v53 }
 0x201   : > { %v3177_v40 = vmax.f32 %v3145_v55, 0.0  ;;  %v3108_v20 = vmul.f32 %v4457_v21, %v6040_v48 }
 0x202   : > { %v4222_v54 = vpop.f32.mrb[22].mxu1  ;;  %v3176_v19 = vmax.f32 %v3144_v10, 0.0  ;;  %v3107_v13 = vmul.f32 %v4458_v12, %v6040_v48  ;;  %v4422_v39 = vpop.f32.mrb[22].mxu0 }
 0x203   : > { %v1917_v41 = vpop.f32.mrb[23].mxu1  ;;  %3209 = vst [vmem:[%s6055_s22 + $0x98] sm:$0xff] %v3177_v40  ;;  %v3147_v17 = vadd.f32 %v6045_v47, %v3108_v20  ;;  %v4459_v61 = vadd.f32 %v4422_v39, %v4222_v54  ;;  %v2999_v45 = vpop.f32.mrb[23].mxu0 }
 0x204   : > { %3208 = vst [vmem:[%s6055_s22 + $0x90] sm:$0xff] %v3176_v19  ;;  %v3146_v33 = vadd.f32 %v6045_v47, %v3107_v13  ;;  %v4460_v5 = vadd.f32 %v2999_v45, %v1917_v41 }
 0x205   : > { %v3179_v0 = vmax.f32 %v3147_v17, 0.0  ;;  %v3110_v11 = vmul.f32 %v4459_v61, %v6040_v48 }
 0x206   : > { %v4225_v63 = vpop.f32.mrb[24].mxu1  ;;  %v3178_v16 = vmax.f32 %v3146_v33, 0.0  ;;  %v3109_v23 = vmul.f32 %v4460_v5, %v6040_v48  ;;  %v4425_v57 = vpop.f32.mrb[24].mxu0 }
 0x207   : > { %v1927_v30 = vpop.f32.mrb[25].mxu1  ;;  %3211 = vst [vmem:[%s6055_s22 + $0xa8] sm:$0xff] %v3179_v0  ;;  %v3149_v38 = vadd.f32 %v6045_v47, %v3110_v11  ;;  %v4461_v37 = vadd.f32 %v4425_v57, %v4225_v63  ;;  %v3009_v62 = vpop.f32.mrb[25].mxu0 }
 0x208   : > { %3210 = vst [vmem:[%s6055_s22 + $0xa0] sm:$0xff] %v3178_v16  ;;  %v3148_v4 = vadd.f32 %v6045_v47, %v3109_v23  ;;  %v4462_v49 = vadd.f32 %v3009_v62, %v1927_v30 }
 0x209   : > { %v3181_v35 = vmax.f32 %v3149_v38, 0.0  ;;  %v3112_v56 = vmul.f32 %v4461_v37, %v6040_v48 }
 0x20a   : > { %v4228_v44 = vpop.f32.mrb[26].mxu1  ;;  %v3180_v27 = vmax.f32 %v3148_v4, 0.0  ;;  %v3111_v2 = vmul.f32 %v4462_v49, %v6040_v48  ;;  %v4428_v34 = vpop.f32.mrb[26].mxu0 }
 0x20b   : > { %v1937_v60 = vpop.f32.mrb[27].mxu1  ;;  %3213 = vst [vmem:[%s6055_s22 + $0xb8] sm:$0xff] %v3181_v35  ;;  %v3151_v1 = vadd.f32 %v6045_v47, %v3112_v56  ;;  %v4463_v15 = vadd.f32 %v4428_v34, %v4228_v44  ;;  %v3019_v14 = vpop.f32.mrb[27].mxu0 }
 0x20c   : > { %3212 = vst [vmem:[%s6055_s22 + $0xb0] sm:$0xff] %v3180_v27  ;;  %v3150_v18 = vadd.f32 %v6045_v47, %v3111_v2  ;;  %v4464_v25 = vadd.f32 %v3019_v14, %v1937_v60 }
 0x20d   : > { %v3183_v31 = vmax.f32 %v3151_v1, 0.0  ;;  %v3114_v36 = vmul.f32 %v4463_v15, %v6040_v48 }
 0x20e   : > { %v4231_v32 = vpop.f32.mrb[28].mxu1  ;;  %v3182_v42 = vmax.f32 %v3150_v18, 0.0  ;;  %v3113_v43 = vmul.f32 %v4464_v25, %v6040_v48  ;;  %v4431_v50 = vpop.f32.mrb[28].mxu0 }
 0x20f   : > { %v1947_v52 = vpop.f32.mrb[29].mxu1  ;;  %3215 = vst [vmem:[%s6055_s22 + $0xc8] sm:$0xff] %v3183_v31  ;;  %v3153_v26 = vadd.f32 %v6045_v47, %v3114_v36  ;;  %v4465_v51 = vadd.f32 %v4431_v50, %v4231_v32  ;;  %v3029_v46 = vpop.f32.mrb[29].mxu0 }
 0x210   : > { %3214 = vst [vmem:[%s6055_s22 + $0xc0] sm:$0xff] %v3182_v42  ;;  %v3152_v9 = vadd.f32 %v6045_v47, %v3113_v43  ;;  %v4466_v6 = vadd.f32 %v3029_v46, %v1947_v52 }
 0x211   : > { %v3185_v58 = vmax.f32 %v3153_v26, 0.0  ;;  %v3116_v59 = vmul.f32 %v4465_v51, %v6040_v48 }
 0x212   : > { %v4234_v3 = vpop.f32.mrb[30].mxu1  ;;  %v3184_v7 = vmax.f32 %v3152_v9, 0.0  ;;  %v3115_v8 = vmul.f32 %v4466_v6, %v6040_v48  ;;  %v4434_v22 = vpop.f32.mrb[30].mxu0 }
 0x213   : > { %v1957_v28 = vpop.f32.mrb[31].mxu1  ;;  %3217 = vst [vmem:[%s6055_s22 + $0xd8] sm:$0xff] %v3185_v58  ;;  %v3155_v29 = vadd.f32 %v6045_v47, %v3116_v59  ;;  %v4467_v53 = vadd.f32 %v4434_v22, %v4234_v3  ;;  %v3039_v55 = vpop.f32.mrb[31].mxu0 }
 0x214   : > { %3216 = vst [vmem:[%s6055_s22 + $0xd0] sm:$0xff] %v3184_v7  ;;  %v3154_v21 = vadd.f32 %v6045_v47, %v3115_v8  ;;  %v4468_v24 = vadd.f32 %v3039_v55, %v1957_v28 }
 0x215   : > { %v3187_v10 = vmax.f32 %v3155_v29, 0.0  ;;  %v3118_v12 = vmul.f32 %v4467_v53, %v6040_v48 }
 0x216   : > { %v3186_v40 = vmax.f32 %v3154_v21, 0.0  ;;  %v3117_v20 = vmul.f32 %v4468_v24, %v6040_v48 }
 0x217   : > { %3219 = vst [vmem:[%s6055_s22 + $0xe8] sm:$0xff] %v3187_v10  ;;  %v3157_v54 = vadd.f32 %v6045_v47, %v3118_v12 }
 0x218   : > { %3218 = vst [vmem:[%s6055_s22 + $0xe0] sm:$0xff] %v3186_v40  ;;  %v3156_v19 = vadd.f32 %v6045_v47, %v3117_v20 }
 0x219   : > { %v3189_v13 = vmax.f32 %v3157_v54, 0.0 }
 0x21a   : > { %v3188_v48 = vmax.f32 %v3156_v19, 0.0 }
 0x21b   : > { %3221 = vst [vmem:[%s6055_s22 + $0xf8] sm:$0xff] %v3189_v13 }
 0x21c   : > { %3220 = vst [vmem:[%s6055_s22 + $0xf0] sm:$0xff] %v3188_v48 }
 0x21d   : > { %4764 = shalt.err (!%p4761_p5)
}
 0x21e   : > { %s4765_s10 = scalar_lea.hbm %s6156_s5, 4096  ;;  %s4769_s13 = scalar_lea.hbm %s6214_s4, 8192 }
 0x21f   : > { %p4766_p6 = scmp.ne.s32.totalorder %s6156_s5, %s4765_s10  ;;  %p4770_p10 = scmp.lt.u32.totalorder %s6156_s5, %s6214_s4 }
 0x220   : > { %p4771_p11 = scmp.lt.u32.totalorder %s4769_s13, %s4765_s10  ;;  %p4773_p13 = scmp.lt.u32.totalorder %s4765_s10, %s6156_s5 }
 0x221   : > { %p4767_p7 = pnand %p4766_p6, %p4899_p4 }
 0x222   : > { %p4772_p12 = por %p4771_p11, %p4770_p10 }
 0x223   : > { %p4768_p9 = pneg %p4767_p7 }
 0x224   : > { %p4774_p0 = por %p4773_p13, %p4772_p12 }
 0x226   : > { %p4775_p1 = pnand %p4774_p0, %p4768_p9 }
 0x228   : > { %4778 = shalt.err (!%p4775_p1)
}
 0x229   : > { %s4832_s22 = smov 128   ;;  %s4833_s24 = smov 8  }
 0x22a   : > { %4694 = dma.vmem_to_hbm [thread:$0]  (%p4899_p4), %s6158_s26, 4096, %s6156_s5, %s6164_s18, %s4832_s22, %s4832_s22, %s4833_s24  }
 0x22b PF: > { %p4700_p2 = scmp.ge.s32.totalorder %s4829_s20, 2  ;;  %s3255_s29 = sand.u32 1, %s4809_s15  }
 0x22c   : > { %s3256_s30 = scalar_lea.sflag [#allocation3], %s3255_s29 }
 0x22d   : > { %p4697_p3 = pnand %p4700_p2, %p4906_p8 }
 0x22f   : > { %4804 = dma.done.wait (!%p4697_p3), %s3256_s30, 4096  }
 0x230   : > { %4806 = vsyncadd (!%p4697_p3), %s3256_s30, 4294963200  ;;  %s17_s20 = sadd.s32 1, %s4829_s20   ;;  %s6391_s15 = smov %s4813_s16 }
 0x231   : > { %p14_p5 = scmp.ge.s32.totalorder %s17_s20, 4   ;;  %s6392_s16 = smov %s4817_s17 }
 0x232   : > { %s6393_s17 = smov %s4912_s28  ;;  %s6394_s18 = smov %s4825_s19 }
 0x233   : > { %s6395_s19 = smov %s6397_s23  ;;  %16 = sbr.rel (!%p14_p5) target bundleno = 4 (0x4), region = 88 }
 0x23a   :  { %3261 = vsyncpa [#allocation3], 1 }
 0x23b   :  { %3263 = vsyncpa [#allocation3 + $0x1], 1 }

</bundles_post_ra>
